<compile_context>
chip_gen: v7x
topology: tpu7x:2x2x1
jax: 0.10.0
libtpu: 0.0.40
codegen_flags: <defaults>
</compile_context>

<pallas_src>
import functools

import jax
import jax.numpy as jnp
from jax import lax
from jax.experimental import pallas as pl
from jax.experimental.pallas import tpu as pltpu

# ----------------------------- small config (mirrors ModelArgs semantics) ----
CFG = dict(
    vocab_size=256,
    n_layer=2,
    num_attention_heads=4,
    num_key_value_heads=2,
    hidden_size=64,
    intermediate_size=128,
    rope_base=1_000_000.0,
    norm_eps=1e-6,
    max_position_embeddings=64,
)
# __post_init__: head_dim = hidden_size // num_attention_heads
CFG["head_dim"] = CFG["hidden_size"] // CFG["num_attention_heads"]


# ----------------------------------- kernel ----------------------------------
def _rmsnorm(x, w, eps):
    var = jnp.mean(x * x, axis=-1, keepdims=True)
    return x * lax.rsqrt(var + eps) * w


def _fwd_kernel(*refs, n_layer, eps, scale, S, nH, nKV, Dh, I, V):
    # refs = [idx, embed, cos, sin, rot, 7*n_layer layer weights,
    #         final_norm, lm_head, out]
    idx_ref, embed_ref, cos_ref, sin_ref, rot_ref = refs[:5]
    layer_refs = refs[5:5 + 7 * n_layer]
    wfinal_ref, wlm_ref = refs[5 + 7 * n_layer:5 + 7 * n_layer + 2]
    o_ref = refs[-1]

    n_rep = nH // nKV
    Dq, Dkv = nH * Dh, nKV * Dh

    # ---------- embedding gather fused in-kernel (one-hot @ table on MXU) ----
    ids = idx_ref[...]                                                 # (S,1) i32
    eq = lax.broadcasted_iota(jnp.int32, (S, V), 1) == ids             # (S,V) bool
    onehot = jnp.where(eq, 1.0, 0.0).astype(jnp.bfloat16)
    x = jnp.dot(onehot, embed_ref[...],
                preferred_element_type=jnp.float32)                    # (S,H) f32

    # ---------- causal mask for all heads, built once --------------------------
    row = lax.broadcasted_iota(jnp.int32, (S, S), 0)
    col = lax.broadcasted_iota(jnp.int32, (S, S), 1)
    causal = col <= row                                                # (S,S)
    mask = jnp.concatenate([causal] * nH, axis=0)                      # (nH*S, S)

    cos_f = cos_ref[...]                                               # (S,128) f32
    sin_f = sin_ref[...]
    rot = rot_ref[...]                                                 # (128,128) bf16

    for li in range(n_layer):
        win, wpost, wqkv, bqkv, wo, wgu, wd = layer_refs[7 * li:7 * li + 7]

        # -------- input RMSNorm + fused QKV projection (lane-dense N=128) ----
        h = _rmsnorm(x, win[...], eps)
        qkv = jnp.dot(h.astype(jnp.bfloat16), wqkv[...],
                      preferred_element_type=jnp.float32) + bqkv[...]  # (S,128)

        # -------- RoPE over the whole 128-wide buffer (identity on v block) --
        qkv = qkv * cos_f + jnp.dot(qkv.astype(jnp.bfloat16), rot,
                                    preferred_element_type=jnp.float32) * sin_f

        q = qkv[:, :Dq]
        k = qkv[:, Dq:Dq + Dkv]
        v = qkv[:, Dq + Dkv:]

        # -------- all-head scores stacked on sublanes, one batched softmax ---
        scores = []
        for hh in range(nH):                                           # static unroll
            kvh = hh // n_rep                                          # GQA sharing
            q_h = q[:, hh * Dh:(hh + 1) * Dh].astype(jnp.bfloat16)
            k_h = k[:, kvh * Dh:(kvh + 1) * Dh].astype(jnp.bfloat16)
            scores.append(lax.dot_general(q_h, k_h, (((1,), (1,)), ((), ())),
                                          preferred_element_type=jnp.float32))
        s_all = jnp.concatenate(scores, axis=0) * scale                # (nH*S, S)
        s_all = jnp.where(mask, s_all, -1e30)
        m = jnp.max(s_all, axis=-1, keepdims=True)
        p = jnp.exp(s_all - m)
        p = p * pl.reciprocal(jnp.sum(p, axis=-1, keepdims=True), approx=True)

        # -------- per-head P@V -> single o_proj matmul (K = nH*Dh) -----------
        p_b = p.astype(jnp.bfloat16)
        outs = []
        for hh in range(nH):
            kvh = hh // n_rep
            v_h = v[:, kvh * Dh:(kvh + 1) * Dh].astype(jnp.bfloat16)
            outs.append(jnp.dot(p_b[hh * S:(hh + 1) * S, :], v_h,
                                preferred_element_type=jnp.float32))
        o_all = jnp.concatenate(outs, axis=1)                          # (S, nH*Dh)
        attn = jnp.dot(o_all.astype(jnp.bfloat16), wo[...],
                       preferred_element_type=jnp.float32)
        h1 = x + attn                                                  # residual 1

        # -------- post-attn RMSNorm + fused gate/up SwiGLU MLP ---------------
        h2 = _rmsnorm(h1, wpost[...], eps)
        gu = jnp.dot(h2.astype(jnp.bfloat16), wgu[...],
                     preferred_element_type=jnp.float32)               # (S, 2I)
        g, u = gu[:, :I], gu[:, I:]
        act = g * jax.nn.sigmoid(g) * u                                # SiLU(g)*u
        down = jnp.dot(act.astype(jnp.bfloat16), wd[...],
                       preferred_element_type=jnp.float32)
        x = h1 + down                                                  # residual 2

    # ---------- final RMSNorm + lm_head (lane-dense V=256 output) ------------
    hf = _rmsnorm(x, wfinal_ref[...], eps)
    o_ref[...] = jnp.dot(hf.astype(jnp.bfloat16), wlm_ref[...],
                         preferred_element_type=jnp.float32).astype(o_ref.dtype)


# ------------------------------------ JAX glue --------------------------------
def rope_cache(max_pos, dim, base):
    inv_freq = 1.0 / (base ** (jnp.arange(0, dim, 2, dtype=jnp.float32) / dim))
    t = jnp.arange(max_pos, dtype=jnp.float32)
    freqs = t[:, None] * inv_freq[None, :]
    emb = jnp.concatenate([freqs, freqs], axis=-1)   # == stack/transpose/reshape
    return jnp.cos(emb), jnp.sin(emb)


def rotate_half_matrix(n_heads, Dh):
    # R such that rotate_half(x) == x @ R for x laid out as (..., n_heads*Dh),
    # applied independently (block-diagonal) per head.
    D = n_heads * Dh
    half = Dh // 2
    i = jnp.arange(D)[:, None]
    j = jnp.arange(D)[None, :]
    same_head = (i // Dh) == (j // Dh)
    plus = jnp.logical_and(same_head, j == i + half).astype(jnp.float32)
    minus = jnp.logical_and(same_head, j == i - half).astype(jnp.float32)
    return plus - minus


def init_params(key, cfg):
    H = cfg["hidden_size"]
    Dh = cfg["head_dim"]
    nH = cfg["num_attention_heads"]
    nKV = cfg["num_key_value_heads"]
    I = cfg["intermediate_size"]
    V = cfg["vocab_size"]

    ks = jax.random.split(key, 2 + cfg["n_layer"])

    def nrm(k, shape, dtype=jnp.bfloat16, scale=0.02):
        return (scale * jax.random.normal(k, shape, jnp.float32)).astype(dtype)

    params = dict(
        embed=nrm(ks[0], (V, H)),                          # bf16 MXU operand
        lm_head_t=nrm(ks[1], (H, V)),                      # pre-transposed, bf16
        final_norm_w=jnp.ones((1, H), jnp.float32),
        layers=[],
    )
    for li in range(cfg["n_layer"]):
        lk = jax.random.split(ks[2 + li], 10)
        wq_t = nrm(lk[0], (H, nH * Dh))
        wk_t = nrm(lk[2], (H, nKV * Dh))
        wv_t = nrm(lk[4], (H, nKV * Dh))
        bq = nrm(lk[1], (1, nH * Dh), jnp.float32)
        bk = nrm(lk[3], (1, nKV * Dh), jnp.float32)
        bv = nrm(lk[5], (1, nKV * Dh), jnp.float32)
        params["layers"].append(dict(
            in_norm_w=jnp.ones((1, H), jnp.float32),
            post_norm_w=jnp.ones((1, H), jnp.float32),
            wqkv_t=jnp.concatenate([wq_t, wk_t, wv_t], axis=1),    # (H,128) bf16
            bqkv=jnp.concatenate([bq, bk, bv], axis=1),            # (1,128) f32
            wo_t=nrm(lk[6], (nH * Dh, H)),                         # (64,64) bf16
            wgu_t=jnp.concatenate([nrm(lk[7], (H, I)),
                                   nrm(lk[8], (H, I))], axis=1),   # (H,2I) bf16
            wd_t=nrm(lk[9], (I, H)),                               # (I,H) bf16
        ))
    return params


def qwen_forward(idx, params, cos_cache, sin_cache, cfg):
    B, S = idx.shape
    H = cfg["hidden_size"]
    Dh = cfg["head_dim"]
    nH = cfg["num_attention_heads"]
    nKV = cfg["num_key_value_heads"]
    I = cfg["intermediate_size"]
    V = cfg["vocab_size"]
    eps = cfg["norm_eps"]
    scale = 1.0 / (Dh ** 0.5)
    Dq, Dkv = nH * Dh, nKV * Dh
    QKVW = Dq + 2 * Dkv                                   # 128

    # token ids, one column per row (positions = arange(S) per batch element)
    idx2d = idx.reshape(B * S, 1).astype(jnp.int32)

    # 128-wide RoPE tables for the fused qkv layout (identity over the v block)
    cos_rows = cos_cache[:S]
    sin_rows = sin_cache[:S]
    cos_full = jnp.concatenate([jnp.tile(cos_rows, (1, nH)),
                                jnp.tile(cos_rows, (1, nKV)),
                                jnp.ones((S, Dkv), jnp.float32)], axis=1)
    sin_full = jnp.concatenate([jnp.tile(sin_rows, (1, nH)),
                                jnp.tile(sin_rows, (1, nKV)),
                                jnp.zeros((S, Dkv), jnp.float32)], axis=1)
    rot_full = jnp.zeros((QKVW, QKVW), jnp.float32)
    rot_full = rot_full.at[:Dq, :Dq].set(rotate_half_matrix(nH, Dh))
    rot_full = rot_full.at[Dq:Dq + Dkv, Dq:Dq + Dkv].set(rotate_half_matrix(nKV, Dh))
    rot_full = rot_full.astype(jnp.bfloat16)

    inputs = [idx2d, params["embed"], cos_full, sin_full, rot_full]
    for layer in params["layers"]:
        inputs += [layer["in_norm_w"], layer["post_norm_w"], layer["wqkv_t"],
                   layer["bqkv"], layer["wo_t"], layer["wgu_t"], layer["wd_t"]]
    inputs += [params["final_norm_w"], params["lm_head_t"]]

    def fixed(shape):                                      # same block for all b
        return pl.BlockSpec(shape, lambda b: (0, 0))

    in_specs = [pl.BlockSpec((S, 1), lambda b: (b, 0)),    # idx rows of batch b
                fixed((V, H)),                             # embed table
                fixed((S, QKVW)), fixed((S, QKVW)),        # cos / sin
                fixed((QKVW, QKVW))]                       # rotation matrix
    for _ in params["layers"]:
        in_specs += [fixed((1, H)), fixed((1, H)), fixed((H, QKVW)),
                     fixed((1, QKVW)), fixed((Dq, H)), fixed((H, 2 * I)),
                     fixed((I, H))]
    in_specs += [fixed((1, H)), fixed((H, V))]

    kernel = functools.partial(_fwd_kernel, n_layer=cfg["n_layer"], eps=eps,
                               scale=scale, S=S, nH=nH, nKV=nKV, Dh=Dh, I=I, V=V)

    logits = pl.pallas_call(
        kernel,
        out_shape=jax.ShapeDtypeStruct((B * S, V), jnp.float32),
        grid=(B,),
        in_specs=in_specs,
        out_specs=pl.BlockSpec((S, V), lambda b: (b, 0)),
        compiler_params=pltpu.CompilerParams(
            dimension_semantics=("parallel",)),            # v7x: one batch per TC
    )(*inputs)
    return logits.reshape(B, S, V)

# TODO(synk): kv_cache / input_pos incremental-decode path is not exercised by the
# reference forward (kv_cache is None); only the full causal prefill is implemented.


if __name__ == "__main__":
    key = jax.random.PRNGKey(0)
    k_params, k_idx = jax.random.split(key)

    B, S = 2, 8
    params = init_params(k_params, CFG)
    cos_cache, sin_cache = rope_cache(
        CFG["max_position_embeddings"], CFG["head_dim"], CFG["rope_base"]
    )
    idx = jax.random.randint(k_idx, (B, S), 0, CFG["vocab_size"], dtype=jnp.int32)

    fwd = jax.jit(
        lambda idx, params: qwen_forward(idx, params, cos_cache, sin_cache, CFG)
    )
    logits = fwd(idx, params)
    jax.block_until_ready(logits)

    assert logits.shape == (B, S, CFG["vocab_size"])
    assert logits.dtype == jnp.float32
    assert bool(jnp.all(jnp.isfinite(logits)))
    print("KERNEL_OK")
</pallas_src>

<mosaic_0001>
module attributes {stable_mosaic.version = 11 : i64} {
  func.func @_fwd_kernel(%arg0: i32, %arg1: memref<8x1xi32, #tpu.memory_space<vmem>>, %arg2: memref<256x64xbf16, #tpu.memory_space<vmem>>, %arg3: memref<8x128xf32, #tpu.memory_space<vmem>>, %arg4: memref<8x128xf32, #tpu.memory_space<vmem>>, %arg5: memref<128x128xbf16, #tpu.memory_space<vmem>>, %arg6: memref<1x64xf32, #tpu.memory_space<vmem>>, %arg7: memref<1x64xf32, #tpu.memory_space<vmem>>, %arg8: memref<64x128xbf16, #tpu.memory_space<vmem>>, %arg9: memref<1x128xf32, #tpu.memory_space<vmem>>, %arg10: memref<64x64xbf16, #tpu.memory_space<vmem>>, %arg11: memref<64x256xbf16, #tpu.memory_space<vmem>>, %arg12: memref<128x64xbf16, #tpu.memory_space<vmem>>, %arg13: memref<1x64xf32, #tpu.memory_space<vmem>>, %arg14: memref<1x64xf32, #tpu.memory_space<vmem>>, %arg15: memref<64x128xbf16, #tpu.memory_space<vmem>>, %arg16: memref<1x128xf32, #tpu.memory_space<vmem>>, %arg17: memref<64x64xbf16, #tpu.memory_space<vmem>>, %arg18: memref<64x256xbf16, #tpu.memory_space<vmem>>, %arg19: memref<128x64xbf16, #tpu.memory_space<vmem>>, %arg20: memref<1x64xf32, #tpu.memory_space<vmem>>, %arg21: memref<64x256xbf16, #tpu.memory_space<vmem>>, %arg22: memref<8x256xf32, #tpu.memory_space<vmem>>) attributes {dimension_semantics = [#tpu.dimension_semantics<parallel>], iteration_bounds = array<i64: 2>, scalar_prefetch = 0 : i64, scratch_operands = 0 : i64, tpu.core_type = #tpu.core_type<tc>, window_params = [{transform_indices = @transform_0, window_bounds = array<i64: 8, 1>}, {pipeline_mode = #tpu.pipeline_mode<synchronous>, transform_indices = @transform_1, window_bounds = array<i64: 256, 64>}, {pipeline_mode = #tpu.pipeline_mode<synchronous>, transform_indices = @transform_2, window_bounds = array<i64: 8, 128>}, {pipeline_mode = #tpu.pipeline_mode<synchronous>, transform_indices = @transform_3, window_bounds = array<i64: 8, 128>}, {pipeline_mode = #tpu.pipeline_mode<synchronous>, transform_indices = @transform_4, window_bounds = array<i64: 128, 128>}, {pipeline_mode = #tpu.pipeline_mode<synchronous>, transform_indices = @transform_5, window_bounds = array<i64: 1, 64>}, {pipeline_mode = #tpu.pipeline_mode<synchronous>, transform_indices = @transform_6, window_bounds = array<i64: 1, 64>}, {pipeline_mode = #tpu.pipeline_mode<synchronous>, transform_indices = @transform_7, window_bounds = array<i64: 64, 128>}, {pipeline_mode = #tpu.pipeline_mode<synchronous>, transform_indices = @transform_8, window_bounds = array<i64: 1, 128>}, {pipeline_mode = #tpu.pipeline_mode<synchronous>, transform_indices = @transform_9, window_bounds = array<i64: 64, 64>}, {pipeline_mode = #tpu.pipeline_mode<synchronous>, transform_indices = @transform_10, window_bounds = array<i64: 64, 256>}, {pipeline_mode = #tpu.pipeline_mode<synchronous>, transform_indices = @transform_11, window_bounds = array<i64: 128, 64>}, {pipeline_mode = #tpu.pipeline_mode<synchronous>, transform_indices = @transform_12, window_bounds = array<i64: 1, 64>}, {pipeline_mode = #tpu.pipeline_mode<synchronous>, transform_indices = @transform_13, window_bounds = array<i64: 1, 64>}, {pipeline_mode = #tpu.pipeline_mode<synchronous>, transform_indices = @transform_14, window_bounds = array<i64: 64, 128>}, {pipeline_mode = #tpu.pipeline_mode<synchronous>, transform_indices = @transform_15, window_bounds = array<i64: 1, 128>}, {pipeline_mode = #tpu.pipeline_mode<synchronous>, transform_indices = @transform_16, window_bounds = array<i64: 64, 64>}, {pipeline_mode = #tpu.pipeline_mode<synchronous>, transform_indices = @transform_17, window_bounds = array<i64: 64, 256>}, {pipeline_mode = #tpu.pipeline_mode<synchronous>, transform_indices = @transform_18, window_bounds = array<i64: 128, 64>}, {pipeline_mode = #tpu.pipeline_mode<synchronous>, transform_indices = @transform_19, window_bounds = array<i64: 1, 64>}, {pipeline_mode = #tpu.pipeline_mode<synchronous>, transform_indices = @transform_20, window_bounds = array<i64: 64, 256>}, {transform_indices = @transform_21, window_bounds = array<i64: 8, 256>}]} {
    %c0 = arith.constant 0 : index
    %c0_0 = arith.constant 0 : index
    %0 = vector.load %arg1[%c0, %c0_0] : memref<8x1xi32, #tpu.memory_space<vmem>>, vector<8x1xi32>
    %1 = tpu.iota {dimensions = array<i32: 1>} : vector<8x256xi32>
    %2 = vector.broadcast %0 : vector<8x1xi32> to vector<8x256xi32>
    %3 = arith.cmpi eq, %1, %2 : vector<8x256xi32>
    %cst = arith.constant 1.000000e+00 : f32
    %cst_1 = arith.constant 0.000000e+00 : f32
    %4 = vector.broadcast %cst : f32 to vector<8x256xf32>
    %5 = vector.broadcast %cst_1 : f32 to vector<8x256xf32>
    %6 = arith.select %3, %4, %5 : vector<8x256xi1>, vector<8x256xf32>
    %7 = arith.truncf %6 : vector<8x256xf32> to vector<8x256xbf16>
    %c0_2 = arith.constant 0 : index
    %c0_3 = arith.constant 0 : index
    %8 = vector.load %arg2[%c0_2, %c0_3] : memref<256x64xbf16, #tpu.memory_space<vmem>>, vector<256x64xbf16>
    %cst_4 = arith.constant dense<0.000000e+00> : vector<8x64xf32>
    %9 = tpu.matmul %7, %8, %cst_4 {dimension_numbers = #tpu.dot_dimension_numbers<[1], [0], [0], [1], [0, 0, 1, 1], [], []>} : vector<8x256xbf16>, vector<256x64xbf16>, vector<8x64xf32> -> vector<8x64xf32>
    %10 = tpu.iota {dimensions = array<i32: 0>} : vector<8x8xi32>
    %11 = tpu.iota {dimensions = array<i32: 1>} : vector<8x8xi32>
    %12 = arith.cmpi sle, %11, %10 : vector<8x8xi32>
    %13 = tpu.concatenate %12, %12, %12, %12 in 0 : vector<8x8xi1>, vector<8x8xi1>, vector<8x8xi1>, vector<8x8xi1> -> vector<32x8xi1>
    %c0_5 = arith.constant 0 : index
    %c0_6 = arith.constant 0 : index
    %14 = vector.load %arg3[%c0_5, %c0_6] : memref<8x128xf32, #tpu.memory_space<vmem>>, vector<8x128xf32>
    %c0_7 = arith.constant 0 : index
    %c0_8 = arith.constant 0 : index
    %15 = vector.load %arg4[%c0_7, %c0_8] : memref<8x128xf32, #tpu.memory_space<vmem>>, vector<8x128xf32>
    %c0_9 = arith.constant 0 : index
    %c0_10 = arith.constant 0 : index
    %16 = vector.load %arg5[%c0_9, %c0_10] : memref<128x128xbf16, #tpu.memory_space<vmem>>, vector<128x128xbf16>
    %c0_11 = arith.constant 0 : index
    %c0_12 = arith.constant 0 : index
    %17 = vector.load %arg6[%c0_11, %c0_12] : memref<1x64xf32, #tpu.memory_space<vmem>>, vector<1x64xf32>
    %18 = arith.mulf %9, %9 : vector<8x64xf32>
    %cst_13 = arith.constant dense<0.000000e+00> : vector<8xf32>
    %19 = vector.multi_reduction <add>, %18, %cst_13 [1] : vector<8x64xf32> to vector<8xf32>
    %20 = vector.shape_cast %19 : vector<8xf32> to vector<8x1xf32>
    %cst_14 = arith.constant 6.400000e+01 : f32
    %21 = vector.broadcast %cst_14 : f32 to vector<8x1xf32>
    %22 = arith.divf %20, %21 : vector<8x1xf32>
    %cst_15 = arith.constant 9.99999997E-7 : f32
    %23 = vector.broadcast %cst_15 : f32 to vector<8x1xf32>
    %24 = arith.addf %22, %23 : vector<8x1xf32>
    %25 = math.rsqrt %24 : vector<8x1xf32>
    %26 = vector.broadcast %25 : vector<8x1xf32> to vector<8x64xf32>
    %27 = arith.mulf %9, %26 : vector<8x64xf32>
    %28 = vector.broadcast %17 : vector<1x64xf32> to vector<8x64xf32>
    %29 = arith.mulf %27, %28 : vector<8x64xf32>
    %30 = arith.truncf %29 : vector<8x64xf32> to vector<8x64xbf16>
    %c0_16 = arith.constant 0 : index
    %c0_17 = arith.constant 0 : index
    %31 = vector.load %arg8[%c0_16, %c0_17] : memref<64x128xbf16, #tpu.memory_space<vmem>>, vector<64x128xbf16>
    %cst_18 = arith.constant dense<0.000000e+00> : vector<8x128xf32>
    %32 = tpu.matmul %30, %31, %cst_18 {dimension_numbers = #tpu.dot_dimension_numbers<[1], [0], [0], [1], [0, 0, 1, 1], [], []>} : vector<8x64xbf16>, vector<64x128xbf16>, vector<8x128xf32> -> vector<8x128xf32>
    %c0_19 = arith.constant 0 : index
    %c0_20 = arith.constant 0 : index
    %33 = vector.load %arg9[%c0_19, %c0_20] : memref<1x128xf32, #tpu.memory_space<vmem>>, vector<1x128xf32>
    %34 = vector.broadcast %33 : vector<1x128xf32> to vector<8x128xf32>
    %35 = arith.addf %32, %34 : vector<8x128xf32>
    %36 = arith.mulf %35, %14 : vector<8x128xf32>
    %37 = arith.truncf %35 : vector<8x128xf32> to vector<8x128xbf16>
    %cst_21 = arith.constant dense<0.000000e+00> : vector<8x128xf32>
    %38 = tpu.matmul %37, %16, %cst_21 {dimension_numbers = #tpu.dot_dimension_numbers<[1], [0], [0], [1], [0, 0, 1, 1], [], []>} : vector<8x128xbf16>, vector<128x128xbf16>, vector<8x128xf32> -> vector<8x128xf32>
    %39 = arith.mulf %38, %15 : vector<8x128xf32>
    %40 = arith.addf %36, %39 : vector<8x128xf32>
    %41 = vector.extract_strided_slice %40 {offsets = [0, 0], sizes = [8, 64], strides = [1, 1]} : vector<8x128xf32> to vector<8x64xf32>
    %42 = vector.extract_strided_slice %40 {offsets = [0, 64], sizes = [8, 32], strides = [1, 1]} : vector<8x128xf32> to vector<8x32xf32>
    %43 = vector.extract_strided_slice %40 {offsets = [0, 96], sizes = [8, 32], strides = [1, 1]} : vector<8x128xf32> to vector<8x32xf32>
    %44 = vector.extract_strided_slice %41 {offsets = [0, 0], sizes = [8, 16], strides = [1, 1]} : vector<8x64xf32> to vector<8x16xf32>
    %45 = arith.truncf %44 : vector<8x16xf32> to vector<8x16xbf16>
    %46 = vector.extract_strided_slice %42 {offsets = [0, 0], sizes = [8, 16], strides = [1, 1]} : vector<8x32xf32> to vector<8x16xf32>
    %47 = arith.truncf %46 : vector<8x16xf32> to vector<8x16xbf16>
    %cst_22 = arith.constant dense<0.000000e+00> : vector<8x8xf32>
    %48 = tpu.matmul %45, %47, %cst_22 {dimension_numbers = #tpu.dot_dimension_numbers<[1], [1], [0], [0], [0, 0, 1, 0], [], []>} : vector<8x16xbf16>, vector<8x16xbf16>, vector<8x8xf32> -> vector<8x8xf32>
    %49 = vector.extract_strided_slice %41 {offsets = [0, 16], sizes = [8, 16], strides = [1, 1]} : vector<8x64xf32> to vector<8x16xf32>
    %50 = arith.truncf %49 : vector<8x16xf32> to vector<8x16xbf16>
    %51 = vector.extract_strided_slice %42 {offsets = [0, 0], sizes = [8, 16], strides = [1, 1]} : vector<8x32xf32> to vector<8x16xf32>
    %52 = arith.truncf %51 : vector<8x16xf32> to vector<8x16xbf16>
    %cst_23 = arith.constant dense<0.000000e+00> : vector<8x8xf32>
    %53 = tpu.matmul %50, %52, %cst_23 {dimension_numbers = #tpu.dot_dimension_numbers<[1], [1], [0], [0], [0, 0, 1, 0], [], []>} : vector<8x16xbf16>, vector<8x16xbf16>, vector<8x8xf32> -> vector<8x8xf32>
    %54 = vector.extract_strided_slice %41 {offsets = [0, 32], sizes = [8, 16], strides = [1, 1]} : vector<8x64xf32> to vector<8x16xf32>
    %55 = arith.truncf %54 : vector<8x16xf32> to vector<8x16xbf16>
    %56 = vector.extract_strided_slice %42 {offsets = [0, 16], sizes = [8, 16], strides = [1, 1]} : vector<8x32xf32> to vector<8x16xf32>
    %57 = arith.truncf %56 : vector<8x16xf32> to vector<8x16xbf16>
    %cst_24 = arith.constant dense<0.000000e+00> : vector<8x8xf32>
    %58 = tpu.matmul %55, %57, %cst_24 {dimension_numbers = #tpu.dot_dimension_numbers<[1], [1], [0], [0], [0, 0, 1, 0], [], []>} : vector<8x16xbf16>, vector<8x16xbf16>, vector<8x8xf32> -> vector<8x8xf32>
    %59 = vector.extract_strided_slice %41 {offsets = [0, 48], sizes = [8, 16], strides = [1, 1]} : vector<8x64xf32> to vector<8x16xf32>
    %60 = arith.truncf %59 : vector<8x16xf32> to vector<8x16xbf16>
    %61 = vector.extract_strided_slice %42 {offsets = [0, 16], sizes = [8, 16], strides = [1, 1]} : vector<8x32xf32> to vector<8x16xf32>
    %62 = arith.truncf %61 : vector<8x16xf32> to vector<8x16xbf16>
    %cst_25 = arith.constant dense<0.000000e+00> : vector<8x8xf32>
    %63 = tpu.matmul %60, %62, %cst_25 {dimension_numbers = #tpu.dot_dimension_numbers<[1], [1], [0], [0], [0, 0, 1, 0], [], []>} : vector<8x16xbf16>, vector<8x16xbf16>, vector<8x8xf32> -> vector<8x8xf32>
    %64 = tpu.concatenate %48, %53, %58, %63 in 0 : vector<8x8xf32>, vector<8x8xf32>, vector<8x8xf32>, vector<8x8xf32> -> vector<32x8xf32>
    %cst_26 = arith.constant 2.500000e-01 : f32
    %65 = vector.broadcast %cst_26 : f32 to vector<32x8xf32>
    %66 = arith.mulf %64, %65 : vector<32x8xf32>
    %cst_27 = arith.constant -1.000000e+30 : f32
    %67 = vector.broadcast %cst_27 : f32 to vector<32x8xf32>
    %68 = arith.select %13, %66, %67 : vector<32x8xi1>, vector<32x8xf32>
    %cst_28 = arith.constant dense<0xFF800000> : vector<32xf32>
    %69 = vector.multi_reduction <maximumf>, %68, %cst_28 [1] : vector<32x8xf32> to vector<32xf32>
    %70 = vector.shape_cast %69 : vector<32xf32> to vector<32x1xf32>
    %71 = vector.broadcast %70 : vector<32x1xf32> to vector<32x8xf32>
    %72 = arith.subf %68, %71 : vector<32x8xf32>
    %73 = math.exp %72 : vector<32x8xf32>
    %cst_29 = arith.constant dense<0.000000e+00> : vector<32xf32>
    %74 = vector.multi_reduction <add>, %73, %cst_29 [1] : vector<32x8xf32> to vector<32xf32>
    %75 = vector.shape_cast %74 : vector<32xf32> to vector<32x1xf32>
    %76 = tpu.reciprocal %75 {approx = true} : vector<32x1xf32> -> vector<32x1xf32>
    %77 = vector.broadcast %76 : vector<32x1xf32> to vector<32x8xf32>
    %78 = arith.mulf %73, %77 : vector<32x8xf32>
    %79 = arith.truncf %78 : vector<32x8xf32> to vector<32x8xbf16>
    %80 = vector.extract_strided_slice %43 {offsets = [0, 0], sizes = [8, 16], strides = [1, 1]} : vector<8x32xf32> to vector<8x16xf32>
    %81 = arith.truncf %80 : vector<8x16xf32> to vector<8x16xbf16>
    %82 = vector.extract_strided_slice %79 {offsets = [0, 0], sizes = [8, 8], strides = [1, 1]} : vector<32x8xbf16> to vector<8x8xbf16>
    %cst_30 = arith.constant dense<0.000000e+00> : vector<8x16xf32>
    %83 = tpu.matmul %82, %81, %cst_30 {dimension_numbers = #tpu.dot_dimension_numbers<[1], [0], [0], [1], [0, 0, 1, 1], [], []>} : vector<8x8xbf16>, vector<8x16xbf16>, vector<8x16xf32> -> vector<8x16xf32>
    %84 = vector.extract_strided_slice %43 {offsets = [0, 0], sizes = [8, 16], strides = [1, 1]} : vector<8x32xf32> to vector<8x16xf32>
    %85 = arith.truncf %84 : vector<8x16xf32> to vector<8x16xbf16>
    %86 = vector.extract_strided_slice %79 {offsets = [8, 0], sizes = [8, 8], strides = [1, 1]} : vector<32x8xbf16> to vector<8x8xbf16>
    %cst_31 = arith.constant dense<0.000000e+00> : vector<8x16xf32>
    %87 = tpu.matmul %86, %85, %cst_31 {dimension_numbers = #tpu.dot_dimension_numbers<[1], [0], [0], [1], [0, 0, 1, 1], [], []>} : vector<8x8xbf16>, vector<8x16xbf16>, vector<8x16xf32> -> vector<8x16xf32>
    %88 = vector.extract_strided_slice %43 {offsets = [0, 16], sizes = [8, 16], strides = [1, 1]} : vector<8x32xf32> to vector<8x16xf32>
    %89 = arith.truncf %88 : vector<8x16xf32> to vector<8x16xbf16>
    %90 = vector.extract_strided_slice %79 {offsets = [16, 0], sizes = [8, 8], strides = [1, 1]} : vector<32x8xbf16> to vector<8x8xbf16>
    %cst_32 = arith.constant dense<0.000000e+00> : vector<8x16xf32>
    %91 = tpu.matmul %90, %89, %cst_32 {dimension_numbers = #tpu.dot_dimension_numbers<[1], [0], [0], [1], [0, 0, 1, 1], [], []>} : vector<8x8xbf16>, vector<8x16xbf16>, vector<8x16xf32> -> vector<8x16xf32>
    %92 = vector.extract_strided_slice %43 {offsets = [0, 16], sizes = [8, 16], strides = [1, 1]} : vector<8x32xf32> to vector<8x16xf32>
    %93 = arith.truncf %92 : vector<8x16xf32> to vector<8x16xbf16>
    %94 = vector.extract_strided_slice %79 {offsets = [24, 0], sizes = [8, 8], strides = [1, 1]} : vector<32x8xbf16> to vector<8x8xbf16>
    %cst_33 = arith.constant dense<0.000000e+00> : vector<8x16xf32>
    %95 = tpu.matmul %94, %93, %cst_33 {dimension_numbers = #tpu.dot_dimension_numbers<[1], [0], [0], [1], [0, 0, 1, 1], [], []>} : vector<8x8xbf16>, vector<8x16xbf16>, vector<8x16xf32> -> vector<8x16xf32>
    %96 = tpu.concatenate %83, %87, %91, %95 in 1 : vector<8x16xf32>, vector<8x16xf32>, vector<8x16xf32>, vector<8x16xf32> -> vector<8x64xf32>
    %97 = arith.truncf %96 : vector<8x64xf32> to vector<8x64xbf16>
    %c0_34 = arith.constant 0 : index
    %c0_35 = arith.constant 0 : index
    %98 = vector.load %arg10[%c0_34, %c0_35] : memref<64x64xbf16, #tpu.memory_space<vmem>>, vector<64x64xbf16>
    %cst_36 = arith.constant dense<0.000000e+00> : vector<8x64xf32>
    %99 = tpu.matmul %97, %98, %cst_36 {dimension_numbers = #tpu.dot_dimension_numbers<[1], [0], [0], [1], [0, 0, 1, 1], [], []>} : vector<8x64xbf16>, vector<64x64xbf16>, vector<8x64xf32> -> vector<8x64xf32>
    %100 = arith.addf %9, %99 : vector<8x64xf32>
    %c0_37 = arith.constant 0 : index
    %c0_38 = arith.constant 0 : index
    %101 = vector.load %arg7[%c0_37, %c0_38] : memref<1x64xf32, #tpu.memory_space<vmem>>, vector<1x64xf32>
    %102 = arith.mulf %100, %100 : vector<8x64xf32>
    %cst_39 = arith.constant dense<0.000000e+00> : vector<8xf32>
    %103 = vector.multi_reduction <add>, %102, %cst_39 [1] : vector<8x64xf32> to vector<8xf32>
    %104 = vector.shape_cast %103 : vector<8xf32> to vector<8x1xf32>
    %cst_40 = arith.constant 6.400000e+01 : f32
    %105 = vector.broadcast %cst_40 : f32 to vector<8x1xf32>
    %106 = arith.divf %104, %105 : vector<8x1xf32>
    %cst_41 = arith.constant 9.99999997E-7 : f32
    %107 = vector.broadcast %cst_41 : f32 to vector<8x1xf32>
    %108 = arith.addf %106, %107 : vector<8x1xf32>
    %109 = math.rsqrt %108 : vector<8x1xf32>
    %110 = vector.broadcast %109 : vector<8x1xf32> to vector<8x64xf32>
    %111 = arith.mulf %100, %110 : vector<8x64xf32>
    %112 = vector.broadcast %101 : vector<1x64xf32> to vector<8x64xf32>
    %113 = arith.mulf %111, %112 : vector<8x64xf32>
    %114 = arith.truncf %113 : vector<8x64xf32> to vector<8x64xbf16>
    %c0_42 = arith.constant 0 : index
    %c0_43 = arith.constant 0 : index
    %115 = vector.load %arg11[%c0_42, %c0_43] : memref<64x256xbf16, #tpu.memory_space<vmem>>, vector<64x256xbf16>
    %cst_44 = arith.constant dense<0.000000e+00> : vector<8x256xf32>
    %116 = tpu.matmul %114, %115, %cst_44 {dimension_numbers = #tpu.dot_dimension_numbers<[1], [0], [0], [1], [0, 0, 1, 1], [], []>} : vector<8x64xbf16>, vector<64x256xbf16>, vector<8x256xf32> -> vector<8x256xf32>
    %117 = vector.extract_strided_slice %116 {offsets = [0, 0], sizes = [8, 128], strides = [1, 1]} : vector<8x256xf32> to vector<8x128xf32>
    %118 = vector.extract_strided_slice %116 {offsets = [0, 128], sizes = [8, 128], strides = [1, 1]} : vector<8x256xf32> to vector<8x128xf32>
    %119 = arith.negf %117 : vector<8x128xf32>
    %120 = math.exp %119 : vector<8x128xf32>
    %cst_45 = arith.constant 1.000000e+00 : f32
    %121 = vector.broadcast %cst_45 : f32 to vector<8x128xf32>
    %122 = arith.addf %121, %120 : vector<8x128xf32>
    %123 = arith.divf %121, %122 : vector<8x128xf32>
    %124 = arith.mulf %117, %123 : vector<8x128xf32>
    %125 = arith.mulf %124, %118 : vector<8x128xf32>
    %126 = arith.truncf %125 : vector<8x128xf32> to vector<8x128xbf16>
    %c0_46 = arith.constant 0 : index
    %c0_47 = arith.constant 0 : index
    %127 = vector.load %arg12[%c0_46, %c0_47] : memref<128x64xbf16, #tpu.memory_space<vmem>>, vector<128x64xbf16>
    %cst_48 = arith.constant dense<0.000000e+00> : vector<8x64xf32>
    %128 = tpu.matmul %126, %127, %cst_48 {dimension_numbers = #tpu.dot_dimension_numbers<[1], [0], [0], [1], [0, 0, 1, 1], [], []>} : vector<8x128xbf16>, vector<128x64xbf16>, vector<8x64xf32> -> vector<8x64xf32>
    %129 = arith.addf %100, %128 : vector<8x64xf32>
    %c0_49 = arith.constant 0 : index
    %c0_50 = arith.constant 0 : index
    %130 = vector.load %arg13[%c0_49, %c0_50] : memref<1x64xf32, #tpu.memory_space<vmem>>, vector<1x64xf32>
    %131 = arith.mulf %129, %129 : vector<8x64xf32>
    %cst_51 = arith.constant dense<0.000000e+00> : vector<8xf32>
    %132 = vector.multi_reduction <add>, %131, %cst_51 [1] : vector<8x64xf32> to vector<8xf32>
    %133 = vector.shape_cast %132 : vector<8xf32> to vector<8x1xf32>
    %cst_52 = arith.constant 6.400000e+01 : f32
    %134 = vector.broadcast %cst_52 : f32 to vector<8x1xf32>
    %135 = arith.divf %133, %134 : vector<8x1xf32>
    %cst_53 = arith.constant 9.99999997E-7 : f32
    %136 = vector.broadcast %cst_53 : f32 to vector<8x1xf32>
    %137 = arith.addf %135, %136 : vector<8x1xf32>
    %138 = math.rsqrt %137 : vector<8x1xf32>
    %139 = vector.broadcast %138 : vector<8x1xf32> to vector<8x64xf32>
    %140 = arith.mulf %129, %139 : vector<8x64xf32>
    %141 = vector.broadcast %130 : vector<1x64xf32> to vector<8x64xf32>
    %142 = arith.mulf %140, %141 : vector<8x64xf32>
    %143 = arith.truncf %142 : vector<8x64xf32> to vector<8x64xbf16>
    %c0_54 = arith.constant 0 : index
    %c0_55 = arith.constant 0 : index
    %144 = vector.load %arg15[%c0_54, %c0_55] : memref<64x128xbf16, #tpu.memory_space<vmem>>, vector<64x128xbf16>
    %cst_56 = arith.constant dense<0.000000e+00> : vector<8x128xf32>
    %145 = tpu.matmul %143, %144, %cst_56 {dimension_numbers = #tpu.dot_dimension_numbers<[1], [0], [0], [1], [0, 0, 1, 1], [], []>} : vector<8x64xbf16>, vector<64x128xbf16>, vector<8x128xf32> -> vector<8x128xf32>
    %c0_57 = arith.constant 0 : index
    %c0_58 = arith.constant 0 : index
    %146 = vector.load %arg16[%c0_57, %c0_58] : memref<1x128xf32, #tpu.memory_space<vmem>>, vector<1x128xf32>
    %147 = vector.broadcast %146 : vector<1x128xf32> to vector<8x128xf32>
    %148 = arith.addf %145, %147 : vector<8x128xf32>
    %149 = arith.mulf %148, %14 : vector<8x128xf32>
    %150 = arith.truncf %148 : vector<8x128xf32> to vector<8x128xbf16>
    %cst_59 = arith.constant dense<0.000000e+00> : vector<8x128xf32>
    %151 = tpu.matmul %150, %16, %cst_59 {dimension_numbers = #tpu.dot_dimension_numbers<[1], [0], [0], [1], [0, 0, 1, 1], [], []>} : vector<8x128xbf16>, vector<128x128xbf16>, vector<8x128xf32> -> vector<8x128xf32>
    %152 = arith.mulf %151, %15 : vector<8x128xf32>
    %153 = arith.addf %149, %152 : vector<8x128xf32>
    %154 = vector.extract_strided_slice %153 {offsets = [0, 0], sizes = [8, 64], strides = [1, 1]} : vector<8x128xf32> to vector<8x64xf32>
    %155 = vector.extract_strided_slice %153 {offsets = [0, 64], sizes = [8, 32], strides = [1, 1]} : vector<8x128xf32> to vector<8x32xf32>
    %156 = vector.extract_strided_slice %153 {offsets = [0, 96], sizes = [8, 32], strides = [1, 1]} : vector<8x128xf32> to vector<8x32xf32>
    %157 = vector.extract_strided_slice %154 {offsets = [0, 0], sizes = [8, 16], strides = [1, 1]} : vector<8x64xf32> to vector<8x16xf32>
    %158 = arith.truncf %157 : vector<8x16xf32> to vector<8x16xbf16>
    %159 = vector.extract_strided_slice %155 {offsets = [0, 0], sizes = [8, 16], strides = [1, 1]} : vector<8x32xf32> to vector<8x16xf32>
    %160 = arith.truncf %159 : vector<8x16xf32> to vector<8x16xbf16>
    %cst_60 = arith.constant dense<0.000000e+00> : vector<8x8xf32>
    %161 = tpu.matmul %158, %160, %cst_60 {dimension_numbers = #tpu.dot_dimension_numbers<[1], [1], [0], [0], [0, 0, 1, 0], [], []>} : vector<8x16xbf16>, vector<8x16xbf16>, vector<8x8xf32> -> vector<8x8xf32>
    %162 = vector.extract_strided_slice %154 {offsets = [0, 16], sizes = [8, 16], strides = [1, 1]} : vector<8x64xf32> to vector<8x16xf32>
    %163 = arith.truncf %162 : vector<8x16xf32> to vector<8x16xbf16>
    %164 = vector.extract_strided_slice %155 {offsets = [0, 0], sizes = [8, 16], strides = [1, 1]} : vector<8x32xf32> to vector<8x16xf32>
    %165 = arith.truncf %164 : vector<8x16xf32> to vector<8x16xbf16>
    %cst_61 = arith.constant dense<0.000000e+00> : vector<8x8xf32>
    %166 = tpu.matmul %163, %165, %cst_61 {dimension_numbers = #tpu.dot_dimension_numbers<[1], [1], [0], [0], [0, 0, 1, 0], [], []>} : vector<8x16xbf16>, vector<8x16xbf16>, vector<8x8xf32> -> vector<8x8xf32>
    %167 = vector.extract_strided_slice %154 {offsets = [0, 32], sizes = [8, 16], strides = [1, 1]} : vector<8x64xf32> to vector<8x16xf32>
    %168 = arith.truncf %167 : vector<8x16xf32> to vector<8x16xbf16>
    %169 = vector.extract_strided_slice %155 {offsets = [0, 16], sizes = [8, 16], strides = [1, 1]} : vector<8x32xf32> to vector<8x16xf32>
    %170 = arith.truncf %169 : vector<8x16xf32> to vector<8x16xbf16>
    %cst_62 = arith.constant dense<0.000000e+00> : vector<8x8xf32>
    %171 = tpu.matmul %168, %170, %cst_62 {dimension_numbers = #tpu.dot_dimension_numbers<[1], [1], [0], [0], [0, 0, 1, 0], [], []>} : vector<8x16xbf16>, vector<8x16xbf16>, vector<8x8xf32> -> vector<8x8xf32>
    %172 = vector.extract_strided_slice %154 {offsets = [0, 48], sizes = [8, 16], strides = [1, 1]} : vector<8x64xf32> to vector<8x16xf32>
    %173 = arith.truncf %172 : vector<8x16xf32> to vector<8x16xbf16>
    %174 = vector.extract_strided_slice %155 {offsets = [0, 16], sizes = [8, 16], strides = [1, 1]} : vector<8x32xf32> to vector<8x16xf32>
    %175 = arith.truncf %174 : vector<8x16xf32> to vector<8x16xbf16>
    %cst_63 = arith.constant dense<0.000000e+00> : vector<8x8xf32>
    %176 = tpu.matmul %173, %175, %cst_63 {dimension_numbers = #tpu.dot_dimension_numbers<[1], [1], [0], [0], [0, 0, 1, 0], [], []>} : vector<8x16xbf16>, vector<8x16xbf16>, vector<8x8xf32> -> vector<8x8xf32>
    %177 = tpu.concatenate %161, %166, %171, %176 in 0 : vector<8x8xf32>, vector<8x8xf32>, vector<8x8xf32>, vector<8x8xf32> -> vector<32x8xf32>
    %cst_64 = arith.constant 2.500000e-01 : f32
    %178 = vector.broadcast %cst_64 : f32 to vector<32x8xf32>
    %179 = arith.mulf %177, %178 : vector<32x8xf32>
    %cst_65 = arith.constant -1.000000e+30 : f32
    %180 = vector.broadcast %cst_65 : f32 to vector<32x8xf32>
    %181 = arith.select %13, %179, %180 : vector<32x8xi1>, vector<32x8xf32>
    %cst_66 = arith.constant dense<0xFF800000> : vector<32xf32>
    %182 = vector.multi_reduction <maximumf>, %181, %cst_66 [1] : vector<32x8xf32> to vector<32xf32>
    %183 = vector.shape_cast %182 : vector<32xf32> to vector<32x1xf32>
    %184 = vector.broadcast %183 : vector<32x1xf32> to vector<32x8xf32>
    %185 = arith.subf %181, %184 : vector<32x8xf32>
    %186 = math.exp %185 : vector<32x8xf32>
    %cst_67 = arith.constant dense<0.000000e+00> : vector<32xf32>
    %187 = vector.multi_reduction <add>, %186, %cst_67 [1] : vector<32x8xf32> to vector<32xf32>
    %188 = vector.shape_cast %187 : vector<32xf32> to vector<32x1xf32>
    %189 = tpu.reciprocal %188 {approx = true} : vector<32x1xf32> -> vector<32x1xf32>
    %190 = vector.broadcast %189 : vector<32x1xf32> to vector<32x8xf32>
    %191 = arith.mulf %186, %190 : vector<32x8xf32>
    %192 = arith.truncf %191 : vector<32x8xf32> to vector<32x8xbf16>
    %193 = vector.extract_strided_slice %156 {offsets = [0, 0], sizes = [8, 16], strides = [1, 1]} : vector<8x32xf32> to vector<8x16xf32>
    %194 = arith.truncf %193 : vector<8x16xf32> to vector<8x16xbf16>
    %195 = vector.extract_strided_slice %192 {offsets = [0, 0], sizes = [8, 8], strides = [1, 1]} : vector<32x8xbf16> to vector<8x8xbf16>
    %cst_68 = arith.constant dense<0.000000e+00> : vector<8x16xf32>
    %196 = tpu.matmul %195, %194, %cst_68 {dimension_numbers = #tpu.dot_dimension_numbers<[1], [0], [0], [1], [0, 0, 1, 1], [], []>} : vector<8x8xbf16>, vector<8x16xbf16>, vector<8x16xf32> -> vector<8x16xf32>
    %197 = vector.extract_strided_slice %156 {offsets = [0, 0], sizes = [8, 16], strides = [1, 1]} : vector<8x32xf32> to vector<8x16xf32>
    %198 = arith.truncf %197 : vector<8x16xf32> to vector<8x16xbf16>
    %199 = vector.extract_strided_slice %192 {offsets = [8, 0], sizes = [8, 8], strides = [1, 1]} : vector<32x8xbf16> to vector<8x8xbf16>
    %cst_69 = arith.constant dense<0.000000e+00> : vector<8x16xf32>
    %200 = tpu.matmul %199, %198, %cst_69 {dimension_numbers = #tpu.dot_dimension_numbers<[1], [0], [0], [1], [0, 0, 1, 1], [], []>} : vector<8x8xbf16>, vector<8x16xbf16>, vector<8x16xf32> -> vector<8x16xf32>
    %201 = vector.extract_strided_slice %156 {offsets = [0, 16], sizes = [8, 16], strides = [1, 1]} : vector<8x32xf32> to vector<8x16xf32>
    %202 = arith.truncf %201 : vector<8x16xf32> to vector<8x16xbf16>
    %203 = vector.extract_strided_slice %192 {offsets = [16, 0], sizes = [8, 8], strides = [1, 1]} : vector<32x8xbf16> to vector<8x8xbf16>
    %cst_70 = arith.constant dense<0.000000e+00> : vector<8x16xf32>
    %204 = tpu.matmul %203, %202, %cst_70 {dimension_numbers = #tpu.dot_dimension_numbers<[1], [0], [0], [1], [0, 0, 1, 1], [], []>} : vector<8x8xbf16>, vector<8x16xbf16>, vector<8x16xf32> -> vector<8x16xf32>
    %205 = vector.extract_strided_slice %156 {offsets = [0, 16], sizes = [8, 16], strides = [1, 1]} : vector<8x32xf32> to vector<8x16xf32>
    %206 = arith.truncf %205 : vector<8x16xf32> to vector<8x16xbf16>
    %207 = vector.extract_strided_slice %192 {offsets = [24, 0], sizes = [8, 8], strides = [1, 1]} : vector<32x8xbf16> to vector<8x8xbf16>
    %cst_71 = arith.constant dense<0.000000e+00> : vector<8x16xf32>
    %208 = tpu.matmul %207, %206, %cst_71 {dimension_numbers = #tpu.dot_dimension_numbers<[1], [0], [0], [1], [0, 0, 1, 1], [], []>} : vector<8x8xbf16>, vector<8x16xbf16>, vector<8x16xf32> -> vector<8x16xf32>
    %209 = tpu.concatenate %196, %200, %204, %208 in 1 : vector<8x16xf32>, vector<8x16xf32>, vector<8x16xf32>, vector<8x16xf32> -> vector<8x64xf32>
    %210 = arith.truncf %209 : vector<8x64xf32> to vector<8x64xbf16>
    %c0_72 = arith.constant 0 : index
    %c0_73 = arith.constant 0 : index
    %211 = vector.load %arg17[%c0_72, %c0_73] : memref<64x64xbf16, #tpu.memory_space<vmem>>, vector<64x64xbf16>
    %cst_74 = arith.constant dense<0.000000e+00> : vector<8x64xf32>
    %212 = tpu.matmul %210, %211, %cst_74 {dimension_numbers = #tpu.dot_dimension_numbers<[1], [0], [0], [1], [0, 0, 1, 1], [], []>} : vector<8x64xbf16>, vector<64x64xbf16>, vector<8x64xf32> -> vector<8x64xf32>
    %213 = arith.addf %129, %212 : vector<8x64xf32>
    %c0_75 = arith.constant 0 : index
    %c0_76 = arith.constant 0 : index
    %214 = vector.load %arg14[%c0_75, %c0_76] : memref<1x64xf32, #tpu.memory_space<vmem>>, vector<1x64xf32>
    %215 = arith.mulf %213, %213 : vector<8x64xf32>
    %cst_77 = arith.constant dense<0.000000e+00> : vector<8xf32>
    %216 = vector.multi_reduction <add>, %215, %cst_77 [1] : vector<8x64xf32> to vector<8xf32>
    %217 = vector.shape_cast %216 : vector<8xf32> to vector<8x1xf32>
    %cst_78 = arith.constant 6.400000e+01 : f32
    %218 = vector.broadcast %cst_78 : f32 to vector<8x1xf32>
    %219 = arith.divf %217, %218 : vector<8x1xf32>
    %cst_79 = arith.constant 9.99999997E-7 : f32
    %220 = vector.broadcast %cst_79 : f32 to vector<8x1xf32>
    %221 = arith.addf %219, %220 : vector<8x1xf32>
    %222 = math.rsqrt %221 : vector<8x1xf32>
    %223 = vector.broadcast %222 : vector<8x1xf32> to vector<8x64xf32>
    %224 = arith.mulf %213, %223 : vector<8x64xf32>
    %225 = vector.broadcast %214 : vector<1x64xf32> to vector<8x64xf32>
    %226 = arith.mulf %224, %225 : vector<8x64xf32>
    %227 = arith.truncf %226 : vector<8x64xf32> to vector<8x64xbf16>
    %c0_80 = arith.constant 0 : index
    %c0_81 = arith.constant 0 : index
    %228 = vector.load %arg18[%c0_80, %c0_81] : memref<64x256xbf16, #tpu.memory_space<vmem>>, vector<64x256xbf16>
    %cst_82 = arith.constant dense<0.000000e+00> : vector<8x256xf32>
    %229 = tpu.matmul %227, %228, %cst_82 {dimension_numbers = #tpu.dot_dimension_numbers<[1], [0], [0], [1], [0, 0, 1, 1], [], []>} : vector<8x64xbf16>, vector<64x256xbf16>, vector<8x256xf32> -> vector<8x256xf32>
    %230 = vector.extract_strided_slice %229 {offsets = [0, 0], sizes = [8, 128], strides = [1, 1]} : vector<8x256xf32> to vector<8x128xf32>
    %231 = vector.extract_strided_slice %229 {offsets = [0, 128], sizes = [8, 128], strides = [1, 1]} : vector<8x256xf32> to vector<8x128xf32>
    %232 = arith.negf %230 : vector<8x128xf32>
    %233 = math.exp %232 : vector<8x128xf32>
    %cst_83 = arith.constant 1.000000e+00 : f32
    %234 = vector.broadcast %cst_83 : f32 to vector<8x128xf32>
    %235 = arith.addf %234, %233 : vector<8x128xf32>
    %236 = arith.divf %234, %235 : vector<8x128xf32>
    %237 = arith.mulf %230, %236 : vector<8x128xf32>
    %238 = arith.mulf %237, %231 : vector<8x128xf32>
    %239 = arith.truncf %238 : vector<8x128xf32> to vector<8x128xbf16>
    %c0_84 = arith.constant 0 : index
    %c0_85 = arith.constant 0 : index
    %240 = vector.load %arg19[%c0_84, %c0_85] : memref<128x64xbf16, #tpu.memory_space<vmem>>, vector<128x64xbf16>
    %cst_86 = arith.constant dense<0.000000e+00> : vector<8x64xf32>
    %241 = tpu.matmul %239, %240, %cst_86 {dimension_numbers = #tpu.dot_dimension_numbers<[1], [0], [0], [1], [0, 0, 1, 1], [], []>} : vector<8x128xbf16>, vector<128x64xbf16>, vector<8x64xf32> -> vector<8x64xf32>
    %242 = arith.addf %213, %241 : vector<8x64xf32>
    %c0_87 = arith.constant 0 : index
    %c0_88 = arith.constant 0 : index
    %243 = vector.load %arg20[%c0_87, %c0_88] : memref<1x64xf32, #tpu.memory_space<vmem>>, vector<1x64xf32>
    %244 = arith.mulf %242, %242 : vector<8x64xf32>
    %cst_89 = arith.constant dense<0.000000e+00> : vector<8xf32>
    %245 = vector.multi_reduction <add>, %244, %cst_89 [1] : vector<8x64xf32> to vector<8xf32>
    %246 = vector.shape_cast %245 : vector<8xf32> to vector<8x1xf32>
    %cst_90 = arith.constant 6.400000e+01 : f32
    %247 = vector.broadcast %cst_90 : f32 to vector<8x1xf32>
    %248 = arith.divf %246, %247 : vector<8x1xf32>
    %cst_91 = arith.constant 9.99999997E-7 : f32
    %249 = vector.broadcast %cst_91 : f32 to vector<8x1xf32>
    %250 = arith.addf %248, %249 : vector<8x1xf32>
    %251 = math.rsqrt %250 : vector<8x1xf32>
    %252 = vector.broadcast %251 : vector<8x1xf32> to vector<8x64xf32>
    %253 = arith.mulf %242, %252 : vector<8x64xf32>
    %254 = vector.broadcast %243 : vector<1x64xf32> to vector<8x64xf32>
    %255 = arith.mulf %253, %254 : vector<8x64xf32>
    %256 = arith.truncf %255 : vector<8x64xf32> to vector<8x64xbf16>
    %c0_92 = arith.constant 0 : index
    %c0_93 = arith.constant 0 : index
    %257 = vector.load %arg21[%c0_92, %c0_93] : memref<64x256xbf16, #tpu.memory_space<vmem>>, vector<64x256xbf16>
    %cst_94 = arith.constant dense<0.000000e+00> : vector<8x256xf32>
    %258 = tpu.matmul %256, %257, %cst_94 {dimension_numbers = #tpu.dot_dimension_numbers<[1], [0], [0], [1], [0, 0, 1, 1], [], []>} : vector<8x64xbf16>, vector<64x256xbf16>, vector<8x256xf32> -> vector<8x256xf32>
    %c0_95 = arith.constant 0 : index
    %c0_96 = arith.constant 0 : index
    %259 = vector.load %arg22[%c0_95, %c0_96] : memref<8x256xf32, #tpu.memory_space<vmem>>, vector<8x256xf32>
    tpu.vector_store %arg22[%c0_95, %c0_96], %258 {strides = array<i32>} : memref<8x256xf32, #tpu.memory_space<vmem>>, vector<8x256xf32>,
    return
  }
  func.func @transform_0(%arg0: i32) -> (i32, i32) {
    %c0_i32 = arith.constant 0 : i32
    %c0_i32_0 = arith.constant 0 : i32
    return %arg0, %c0_i32 : i32, i32
  }
  func.func @transform_1(%arg0: i32) -> (i32, i32) {
    %c0_i32 = arith.constant 0 : i32
    %c0_i32_0 = arith.constant 0 : i32
    %c0_i32_1 = arith.constant 0 : i32
    return %c0_i32, %c0_i32_0 : i32, i32
  }
  func.func @transform_2(%arg0: i32) -> (i32, i32) {
    %c0_i32 = arith.constant 0 : i32
    %c0_i32_0 = arith.constant 0 : i32
    %c0_i32_1 = arith.constant 0 : i32
    return %c0_i32, %c0_i32_0 : i32, i32
  }
  func.func @transform_3(%arg0: i32) -> (i32, i32) {
    %c0_i32 = arith.constant 0 : i32
    %c0_i32_0 = arith.constant 0 : i32
    %c0_i32_1 = arith.constant 0 : i32
    return %c0_i32, %c0_i32_0 : i32, i32
  }
  func.func @transform_4(%arg0: i32) -> (i32, i32) {
    %c0_i32 = arith.constant 0 : i32
    %c0_i32_0 = arith.constant 0 : i32
    %c0_i32_1 = arith.constant 0 : i32
    return %c0_i32, %c0_i32_0 : i32, i32
  }
  func.func @transform_5(%arg0: i32) -> (i32, i32) {
    %c0_i32 = arith.constant 0 : i32
    %c0_i32_0 = arith.constant 0 : i32
    %c0_i32_1 = arith.constant 0 : i32
    return %c0_i32, %c0_i32_0 : i32, i32
  }
  func.func @transform_6(%arg0: i32) -> (i32, i32) {
    %c0_i32 = arith.constant 0 : i32
    %c0_i32_0 = arith.constant 0 : i32
    %c0_i32_1 = arith.constant 0 : i32
    return %c0_i32, %c0_i32_0 : i32, i32
  }
  func.func @transform_7(%arg0: i32) -> (i32, i32) {
    %c0_i32 = arith.constant 0 : i32
    %c0_i32_0 = arith.constant 0 : i32
    %c0_i32_1 = arith.constant 0 : i32
    return %c0_i32, %c0_i32_0 : i32, i32
  }
  func.func @transform_8(%arg0: i32) -> (i32, i32) {
    %c0_i32 = arith.constant 0 : i32
    %c0_i32_0 = arith.constant 0 : i32
    %c0_i32_1 = arith.constant 0 : i32
    return %c0_i32, %c0_i32_0 : i32, i32
  }
  func.func @transform_9(%arg0: i32) -> (i32, i32) {
    %c0_i32 = arith.constant 0 : i32
    %c0_i32_0 = arith.constant 0 : i32
    %c0_i32_1 = arith.constant 0 : i32
    return %c0_i32, %c0_i32_0 : i32, i32
  }
  func.func @transform_10(%arg0: i32) -> (i32, i32) {
    %c0_i32 = arith.constant 0 : i32
    %c0_i32_0 = arith.constant 0 : i32
    %c0_i32_1 = arith.constant 0 : i32
    return %c0_i32, %c0_i32_0 : i32, i32
  }
  func.func @transform_11(%arg0: i32) -> (i32, i32) {
    %c0_i32 = arith.constant 0 : i32
    %c0_i32_0 = arith.constant 0 : i32
    %c0_i32_1 = arith.constant 0 : i32
    return %c0_i32, %c0_i32_0 : i32, i32
  }
  func.func @transform_12(%arg0: i32) -> (i32, i32) {
    %c0_i32 = arith.constant 0 : i32
    %c0_i32_0 = arith.constant 0 : i32
    %c0_i32_1 = arith.constant 0 : i32
    return %c0_i32, %c0_i32_0 : i32, i32
  }
  func.func @transform_13(%arg0: i32) -> (i32, i32) {
    %c0_i32 = arith.constant 0 : i32
    %c0_i32_0 = arith.constant 0 : i32
    %c0_i32_1 = arith.constant 0 : i32
    return %c0_i32, %c0_i32_0 : i32, i32
  }
  func.func @transform_14(%arg0: i32) -> (i32, i32) {
    %c0_i32 = arith.constant 0 : i32
    %c0_i32_0 = arith.constant 0 : i32
    %c0_i32_1 = arith.constant 0 : i32
    return %c0_i32, %c0_i32_0 : i32, i32
  }
  func.func @transform_15(%arg0: i32) -> (i32, i32) {
    %c0_i32 = arith.constant 0 : i32
    %c0_i32_0 = arith.constant 0 : i32
    %c0_i32_1 = arith.constant 0 : i32
    return %c0_i32, %c0_i32_0 : i32, i32
  }
  func.func @transform_16(%arg0: i32) -> (i32, i32) {
    %c0_i32 = arith.constant 0 : i32
    %c0_i32_0 = arith.constant 0 : i32
    %c0_i32_1 = arith.constant 0 : i32
    return %c0_i32, %c0_i32_0 : i32, i32
  }
  func.func @transform_17(%arg0: i32) -> (i32, i32) {
    %c0_i32 = arith.constant 0 : i32
    %c0_i32_0 = arith.constant 0 : i32
    %c0_i32_1 = arith.constant 0 : i32
    return %c0_i32, %c0_i32_0 : i32, i32
  }
  func.func @transform_18(%arg0: i32) -> (i32, i32) {
    %c0_i32 = arith.constant 0 : i32
    %c0_i32_0 = arith.constant 0 : i32
    %c0_i32_1 = arith.constant 0 : i32
    return %c0_i32, %c0_i32_0 : i32, i32
  }
  func.func @transform_19(%arg0: i32) -> (i32, i32) {
    %c0_i32 = arith.constant 0 : i32
    %c0_i32_0 = arith.constant 0 : i32
    %c0_i32_1 = arith.constant 0 : i32
    return %c0_i32, %c0_i32_0 : i32, i32
  }
  func.func @transform_20(%arg0: i32) -> (i32, i32) {
    %c0_i32 = arith.constant 0 : i32
    %c0_i32_0 = arith.constant 0 : i32
    %c0_i32_1 = arith.constant 0 : i32
    return %c0_i32, %c0_i32_0 : i32, i32
  }
  func.func @transform_21(%arg0: i32) -> (i32, i32) {
    %c0_i32 = arith.constant 0 : i32
    %c0_i32_0 = arith.constant 0 : i32
    return %arg0, %c0_i32 : i32, i32
  }
}

</mosaic_0001>

<bundles_post_ra>
// kernel: tile.23
= control target key start
LH: loop header
LB: loop body
LE: loop exit
PB: predicated region body
PF: predicated region fallthrough
CT: control target
= control target key end

     0   :  { %vm42_vm0 = vcmask 1047556   ;;  %vm44_vm1 = vcmask 130048   ;;  %vm54_vm2 = vcmask 261248   ;;  %s111_s0 = inlined_call_operand.vmem [shape: f32[8,2,16], index: 0, kind: input, shape index: {}]   ;;  %s112_s1 = inlined_call_operand.vmem [shape: f32[8,32], index: 1, kind: output, shape index: {}]  }
   0x1   :  { %v62_v0 = vld [vmem:[%s111_s0 + $0xe] sm:$0x3]  ;;  %v63_v1 = vld [vmem:[%s111_s0 + $0xc] sm:$0x3]  ;;  %v64_v2 = vld [vmem:[%s111_s0 + $0xa] sm:$0x3] }
   0x2   :  { %8 = vst [vmem:[#allocation0 + $0x38] sm:$0x3] %v62_v0  ;;  %13 = vst [vmem:[#allocation0 + $0x30] sm:$0x3] %v63_v1  ;;  %v65_v3 = vld [vmem:[%s111_s0 + $0x8] sm:$0x3] }
   0x3   :  { %18 = vst [vmem:[#allocation0 + $0x28] sm:$0x3] %v64_v2  ;;  %v66_v4 = vld [vmem:[%s111_s0 + $0x6] sm:$0x3]  ;;  %v67_v5 = vld [vmem:[%s111_s0 + $0x4] sm:$0x3] }
   0x4   :  { %23 = vst [vmem:[#allocation0 + $0x20] sm:$0x3] %v65_v3  ;;  %28 = vst [vmem:[#allocation0 + $0x18] sm:$0x3] %v66_v4  ;;  %v68_v6 = vld [vmem:[%s111_s0 + $0x2] sm:$0x3] }
   0x5   :  { %33 = vst [vmem:[#allocation0 + $0x10] sm:$0x3] %v67_v5  ;;  %v38_v7 = vld [vmem:[%s111_s0] sm:$0x3]  ;;  %37 = vst [vmem:[#allocation0 + $0x8] sm:$0x3] %v68_v6 }
   0x6   :  { %39 = vst [vmem:[#allocation0] sm:$0x3] %v38_v7  ;;  %s70_s0 = smov 16  }
   0xb   :  { %v41_v8 = vld [vmem:[#allocation0] ss:$8 sm:$0xf0]   ;;  %v49_v9 = vld [vmem:[#allocation0 + $0x1] ss:$8 sm:$0xf0]  }
   0xd   :  { %v40_v10 = vld [vmem:[#allocation0] ss:$8 sm:$0xf]   ;;  %v47_v11 = vld [vmem:[#allocation0 + $0x1] ss:$8 sm:$0xf]  }
   0xe   :  { %v43_v12 = vsel %vm42_vm0, %v41_v8, %v40_v10  ;;  %v51_v13 = vsel %vm42_vm0, %v49_v9, %v47_v11 }
   0xf   :  { %52 = vrot.lane.b32.xlu0 %v51_v13, %s70_s0  ;;  %45 = vst.msk [vmem:[%s112_s1] sm:$0xff] %vm44_vm1, %v43_v12  }
  0x81   :  { %v53_v14 = vpop.permute.xlu0 %52  }
  0x82   :  { %55 = vst.msk [vmem:[%s112_s1] sm:$0xff] %vm54_vm2, %v53_v14  }

// kernel: tile.19
= control target key start
LH: loop header
LB: loop body
LE: loop exit
PB: predicated region body
PF: predicated region fallthrough
CT: control target
= control target key end

     0   :  { %vm42_vm0 = vcmask 1047556   ;;  %vm44_vm1 = vcmask 130048   ;;  %s93_s22 = smov 16   ;;  %s94_s25 = smov 32   ;;  %vm54_vm2 = vcmask 523648   ;;  %vm64_vm3 = vcmask 392448   ;;  %s146_s0 = inlined_call_operand.vmem [shape: f32[8,4,16], index: 0, kind: input, shape index: {}]   ;;  %s147_s1 = inlined_call_operand.vmem [shape: f32[8,64], index: 1, kind: output, shape index: {}]  }
   0x1   :  { %v82_v0 = vld [vmem:[%s146_s0 + $0x1c] sm:$0xf]  ;;  %v83_v1 = vld [vmem:[%s146_s0 + $0x18] sm:$0xf]  ;;  %v84_v2 = vld [vmem:[%s146_s0 + $0x14] sm:$0xf] }
   0x2   :  { %8 = vst [vmem:[#allocation0 + $0x38] sm:$0xf] %v82_v0  ;;  %13 = vst [vmem:[#allocation0 + $0x30] sm:$0xf] %v83_v1  ;;  %v85_v3 = vld [vmem:[%s146_s0 + $0x10] sm:$0xf] }
   0x3   :  { %18 = vst [vmem:[#allocation0 + $0x28] sm:$0xf] %v84_v2  ;;  %v86_v4 = vld [vmem:[%s146_s0 + $0xc] sm:$0xf]  ;;  %v87_v5 = vld [vmem:[%s146_s0 + $0x8] sm:$0xf] }
   0x4   :  { %23 = vst [vmem:[#allocation0 + $0x20] sm:$0xf] %v85_v3  ;;  %28 = vst [vmem:[#allocation0 + $0x18] sm:$0xf] %v86_v4  ;;  %v88_v6 = vld [vmem:[%s146_s0 + $0x4] sm:$0xf] }
   0x5   :  { %33 = vst [vmem:[#allocation0 + $0x10] sm:$0xf] %v87_v5  ;;  %v38_v7 = vld [vmem:[%s146_s0] sm:$0xf]  ;;  %37 = vst [vmem:[#allocation0 + $0x8] sm:$0xf] %v88_v6 }
   0x6   :  { %39 = vst [vmem:[#allocation0] sm:$0xf] %v38_v7  ;;  %s92_s0 = smov 48   ;;  %vm74_vm4 = vcmask 261248  }
   0xb   :  { %v49_v8 = vld [vmem:[#allocation0 + $0x3] ss:$8 sm:$0xf0]   ;;  %v59_v9 = vld [vmem:[#allocation0 + $0x2] ss:$8 sm:$0xf0]  }
   0xc   :  { %v69_v14 = vld [vmem:[#allocation0 + $0x1] ss:$8 sm:$0xf0]   ;;  %v41_v17 = vld [vmem:[#allocation0] ss:$8 sm:$0xf0]  }
   0xd   :  { %v47_v10 = vld [vmem:[#allocation0 + $0x3] ss:$8 sm:$0xf]   ;;  %v57_v11 = vld [vmem:[#allocation0 + $0x2] ss:$8 sm:$0xf]  }
   0xe   :  { %v51_v12 = vsel %vm42_vm0, %v49_v8, %v47_v10  ;;  %v67_v13 = vld [vmem:[#allocation0 + $0x1] ss:$8 sm:$0xf]   ;;  %v40_v16 = vld [vmem:[#allocation0] ss:$8 sm:$0xf]   ;;  %v61_v18 = vsel %vm42_vm0, %v59_v9, %v57_v11 }
   0xf   :  { %52 = vrot.lane.b32.xlu0 %v51_v12, %s92_s0  ;;  %v71_v15 = vsel %vm42_vm0, %v69_v14, %v67_v13  ;;  %v43_v19 = vsel %vm42_vm0, %v41_v17, %v40_v16 }
  0x10   :  { %72 = vrot.lane.b32.xlu1 %v71_v15, %s93_s22  ;;  %45 = vst.msk [vmem:[%s147_s1] sm:$0xff] %vm44_vm1, %v43_v19  }
  0x13   :  { %62 = vrot.lane.b32.xlu0 %v61_v18, %s94_s25 }
  0x81   :  { %v53_v20 = vpop.permute.xlu0 %52  }
  0x82   :  { %55 = vst.msk [vmem:[%s147_s1] sm:$0xff] %vm54_vm2, %v53_v20   ;;  %v73_v21 = vpop.permute.xlu1 %72  }
  0x85   :  { %v63_v22 = vpop.permute.xlu0 %62  }
  0x86   :  { %65 = vst.msk [vmem:[%s147_s1] sm:$0xff] %vm64_vm3, %v63_v22  }
  0x87   :  { %75 = vst.msk [vmem:[%s147_s1] sm:$0xff] %vm74_vm4, %v73_v21  }

// kernel: _lambda_.1
= control target key start
LH: loop header
LB: loop body
LE: loop exit
PB: predicated region body
PF: predicated region fallthrough
CT: control target
= control target key end

     0   :  { %s4384_s0 = inlined_call_operand.vmem [shape: s32[16,1], index: 0, kind: input, shape index: {}]   ;;  %s4385_s1 = inlined_call_operand.vmem [shape: bf16[256,64], index: 1, kind: input, shape index: {}]   ;;  %s4386_s2 = inlined_call_operand.vmem [shape: f32[8,128], index: 2, kind: input, shape index: {}]   ;;  %s4387_s3 = inlined_call_operand.vmem [shape: f32[8,128], index: 3, kind: input, shape index: {}]   ;;  %s4388_s4 = inlined_call_operand.vmem [shape: bf16[128,128], index: 4, kind: input, shape index: {}]   ;;  %s4389_s5 = inlined_call_operand.vmem [shape: f32[1,64], index: 5, kind: input, shape index: {}]   ;;  %s4390_s6 = inlined_call_operand.vmem [shape: f32[1,64], index: 6, kind: input, shape index: {}]   ;;  %s4391_s7 = inlined_call_operand.vmem [shape: bf16[64,128], index: 7, kind: input, shape index: {}]   ;;  %s4392_s8 = inlined_call_operand.vmem [shape: f32[1,128], index: 8, kind: input, shape index: {}]   ;;  %s4393_s9 = inlined_call_operand.vmem [shape: bf16[64,64], index: 9, kind: input, shape index: {}]   ;;  %s4394_s10 = inlined_call_operand.vmem [shape: bf16[64,256], index: 10, kind: input, shape index: {}]   ;;  %s4395_s11 = inlined_call_operand.vmem [shape: bf16[128,64], index: 11, kind: input, shape index: {}]   ;;  %s4396_s12 = inlined_call_operand.vmem [shape: f32[1,64], index: 12, kind: input, shape index: {}]   ;;  %s4397_s13 = inlined_call_operand.vmem [shape: f32[1,64], index: 13, kind: input, shape index: {}]   ;;  %s4398_s14 = inlined_call_operand.vmem [shape: bf16[64,128], index: 14, kind: input, shape index: {}]   ;;  %s4399_s15 = inlined_call_operand.vmem [shape: f32[1,128], index: 15, kind: input, shape index: {}]   ;;  %s4400_s16 = inlined_call_operand.vmem [shape: bf16[64,64], index: 16, kind: input, shape index: {}]   ;;  %s4401_s17 = inlined_call_operand.vmem [shape: bf16[64,256], index: 17, kind: input, shape index: {}]   ;;  %s4402_s18 = inlined_call_operand.vmem [shape: bf16[128,64], index: 18, kind: input, shape index: {}]   ;;  %s4403_s19 = inlined_call_operand.vmem [shape: f32[1,64], index: 19, kind: input, shape index: {}]   ;;  %s4404_s20 = inlined_call_operand.vmem [shape: bf16[64,256], index: 20, kind: input, shape index: {}]   ;;  %s4405_s21 = inlined_call_operand.hbm [shape: f32[16,256], index: 21, kind: output, shape index: {}]  }
   0x1   :  { %4424 = sst [smem:[#allocation12_spill]] %s4384_s0 }
   0x2   :  { %4425 = sst [smem:[#allocation13_spill]] %s4385_s1 }
   0x3   :  { %4426 = sst [smem:[#allocation14_spill]] %s4386_s2 }
   0x4   :  { %4427 = sst [smem:[#allocation15_spill]] %s4387_s3 }
   0x5   :  { %4428 = sst [smem:[#allocation16_spill]] %s4388_s4 }
   0x6   :  { %4429 = sst [smem:[#allocation17_spill]] %s4389_s5 }
   0x7   :  { %4430 = sst [smem:[#allocation18_spill]] %s4403_s19 }
   0x8   :  { %4431 = sst [smem:[#allocation19_spill]] %s4405_s21 }
   0x9   :  { %26 = vsyncpa [#allocation3], 0 }
   0xa   :  { %28 = vsyncpa [#allocation3 + $0x1], 0  ;;  %s3712_s2 = smov 0   ;;  %s3714_s25 = smov 0  }
   0xb   :  { %s3716_s26 = smov 0   ;;  %s3718_s27 = smov 0  }
   0xc LB: > { %4432 = sst [smem:[#allocation5_spill]] %s3576_s2  ;;  %s3733_s3 = sadd.s32 4294967295, %s3588_s27   ;;  %s3588_s27 = sphi %s3718_s27, %s4459_s27   ;;  %s3584_s26 = sphi %s3716_s26, %s4461_s26   ;;  %s3580_s25 = sphi %s3714_s25, %s4463_s25   ;;  %s3576_s2 = sphi %s3712_s2, %s4462_s2  }
   0xd   : > { %4433 = sst [smem:[#allocation6_spill]] %s3584_s26  ;;  %s2871_s28 = sadd.s32 4294967294, %s3588_s27  }
   0xe   : > { %4434 = sst [smem:[#allocation7_spill]] %s3588_s27  ;;  %s3737_s29 = sadd.s32 1, %s3588_s27  }
   0xf   : > { %4435 = sst [smem:[#allocation8_spill]] %s3737_s29  ;;  %s487_s0 = sadd.s32 1, %s3584_s26 }
  0x10   : > { %s484_s4 = ssub.s32 %s3588_s27, %s3737_s29  ;;  %p497_p0 = scmp.ne.s32.totalorder %s3584_s26, %s3580_s25 }
  0x11   : > { %p485_p1 = scmp.eq.s32.totalorder %s484_s4, 0  ;;  %p498_p2 = scmp.eq.s32.totalorder %s3733_s3, 1 }
  0x12   : > { %p503_p3 = scmp.ne.s32.totalorder %s3580_s25, %s3576_s2  ;;  %p504_p4 = scmp.eq.s32.totalorder %s2871_s28, 1 }
  0x13   : > { %s3748_s30 = scalar_select %p485_p1, %s3584_s26, %s487_s0  }
  0x14   : > { %p3750_p5 = por %p498_p2, %p497_p0  ;;  %p3754_p6 = por %p504_p4, %p503_p3 }
  0x15   : > { %4436 = sst [smem:[#allocation9_spill]] %s3748_s30  ;;  %p2874_p7 = scmp.ge.s32.totalorder %s3588_s27, 1 }
  0x16   : > { %s4437_s5 = scalar_select %p3750_p5, 1, 0 }
  0x17   : > { %s4439_s22 = scalar_select %p3754_p6, 1, 0 }
  0x18   : > { %4438 = sst [smem:[#allocation10_spill]] %s4437_s5  ;;  %p589_p8 = scmp.lt.s32.totalorder %s3588_s27, 3 }
  0x19   : > { %4440 = sst [smem:[#allocation11_spill]] %s4439_s22 }
  0x1a   : > { %p590_p9 = pnand %p2874_p7, %p589_p8 }
  0x1b   : > { %p648_p10 = scmp.lt.s32.totalorder (!%p590_p9), %s3733_s3, 1  ;;  %v3590_v0 = vmov (!%p590_p9), 0   ;;  %s4441_s24 = sld [smem:[#allocation13_spill]] (!%p590_p9)  ;;  %v654_v18 = vlaneseq (!%p590_p9)  ;;  %v3591_v22 = vmov (!%p590_p9), 1.0|1.0   ;;  %vm857_vm4 = vcmask (!%p590_p9), 523264  }
  0x1c   : > { %593 = sbr.rel (%p590_p9) target bundleno = 5657 (0x1619), region = 104  ;;  %3383 = vset.pattern.permute.xlu0 (!%p590_p9), %v3590_v0  ;;  %s4442_s23 = sld [smem:[#allocation12_spill]] (!%p590_p9)  ;;  %v3400_v30 = vld [vmem:[%s4391_s7] sm:$0xff] (!%p590_p9)   ;;  %v3592_v31 = vmov (!%p590_p9), 0.0   ;;  %vm3593_vm5 = vmmov (!%p590_p9), 0   ;;  %v3401_v32 = vld [vmem:[%s4391_s7 + $0x8] sm:$0xff] (!%p590_p9)  }
  0x1d   : > { %v3815_v19 = vand.u32 (!%p590_p9), 127, %v654_v18  ;;  %3109 = vmatprep.subr.bf16.mxu1 (!%p590_p9), %v3592_v31  ;;  %3117 = vmatprep.mubr.msk.bf16.mxu1 (!%p590_p9), %vm3593_vm5, %v3592_v31  ;;  %v3402_v33 = vld [vmem:[%s4391_s7 + $0x10] sm:$0xff] (!%p590_p9)   ;;  %v3403_v34 = vld [vmem:[%s4391_s7 + $0x18] sm:$0xff] (!%p590_p9)   ;;  %s4443_s21 = sld [smem:[#allocation17_spill]] (!%p590_p9)  ;;  %v2898_v51 = vld [vmem:[%s4392_s8] ss:$0 sm:$0xff] (!%p590_p9) }
  0x1e   : > { %3110 = vmatpush3.bf16.msra.mxu1 (!%p590_p9), %v3400_v30  ;;  %s3594_s2 = smov (!%p590_p9), 64   ;;  %s4422_s27 = smov (!%p590_p9), 48   ;;  %vm1052_vm6 = vcmask (!%p590_p9), 130048   ;;  %vm1247_vm8 = vcmask (!%p590_p9), 64512   ;;  %vm1299_vm9 = vcmask (!%p590_p9), 1043456   ;;  %vm1494_vm10 = vcmask (!%p590_p9), 261120  }
  0x1f   : > { %v656_v20 = vadd.s32 (!%p590_p9), 128, %v3815_v19  ;;  %3111 = vmatprep.subr.bf16.mxu1 (!%p590_p9), %v3592_v31  ;;  %s3597_s19 = smov (!%p590_p9), 96   ;;  %s4417_s5 = smov (!%p590_p9), 80   ;;  %vm1496_vm11 = vcmask (!%p590_p9), 392192  }
  0x20   : > { %s4420_s22 = smov (!%p590_p9), 16   ;;  %s4418_s0 = smov (!%p590_p9), 32  }
  0x21   : > { %v3384_v1 = vld [vmem:[%s4441_s24 + $0x40] sm:$0xff] (!%p590_p9)   ;;  %v3386_v3 = vld [vmem:[%s4441_s24 + $0x48] sm:$0xff] (!%p590_p9)   ;;  %v3388_v5 = vld [vmem:[%s4441_s24 + $0x50] sm:$0xff] (!%p590_p9)  }
  0x22   : > { %v3385_v2 = vld [vmem:[%s4441_s24] sm:$0xff] (!%p590_p9)   ;;  %2999 = vmatprep.subr.bf16.mxu0 (!%p590_p9), %v3384_v1  ;;  %v3387_v4 = vld [vmem:[%s4441_s24 + $0x8] sm:$0xff] (!%p590_p9)   ;;  %v3389_v7 = vld [vmem:[%s4441_s24 + $0x10] sm:$0xff] (!%p590_p9)   ;;  %3112 = vmatpush3.bf16.msra.mxu1 (!%p590_p9), %v3401_v32 }
  0x23   : > { %s649_s28 = scalar_select %p648_p10, %s3733_s3, 1  ;;  %3000 = vmatpush3.bf16.msra.mxu0 %v3385_v2  ;;  %v3390_v8 = vld [vmem:[%s4441_s24 + $0x58] sm:$0xff]   ;;  %v3392_v10 = vld [vmem:[%s4441_s24 + $0x60] sm:$0xff]   ;;  %v3394_v12 = vld [vmem:[%s4441_s24 + $0x68] sm:$0xff]   ;;  %3113 = vmatprep.subr.bf16.mxu1 %v3592_v31 }
  0x24   : > { %3001 = vmatprep.subr.bf16.mxu0 %v3386_v3  ;;  %v3391_v9 = vld [vmem:[%s4441_s24 + $0x18] sm:$0xff]   ;;  %v3393_v11 = vld [vmem:[%s4441_s24 + $0x20] sm:$0xff]   ;;  %v3395_v13 = vld [vmem:[%s4441_s24 + $0x28] sm:$0xff]  }
  0x25   : > { %s2876_s29 = sshll.u32 %s649_s28, 3  ;;  %v3396_v14 = vld [vmem:[%s4441_s24 + $0x70] sm:$0xff]   ;;  %v3398_v16 = vld [vmem:[%s4441_s24 + $0x78] sm:$0xff]   ;;  %v2897_v39 = vld [vmem:[%s4443_s21] ss:$0 sm:$0xff]  ;;  %s4446_s28 = sld [smem:[#allocation15_spill]] }
  0x26   : > { %s651_s1 = scalar_lea.vmem %s4442_s23, %s2876_s29  ;;  %v3397_v15 = vld [vmem:[%s4441_s24 + $0x30] sm:$0xff]   ;;  %v3399_v17 = vld [vmem:[%s4441_s24 + $0x38] sm:$0xff]   ;;  %3114 = vmatpush3.bf16.msra.mxu1 %v3402_v33  ;;  %s4444_s29 = sld [smem:[#allocation16_spill]] }
  0x27   : > { %v653_v6 = vld [vmem:[%s651_s1] sm:$0xff]  ;;  %3002 = vmatpush3.bf16.msra.mxu0 %v3387_v4  ;;  %3115 = vmatprep.subr.bf16.mxu1 %v3592_v31  ;;  %s4445_s1 = sld [smem:[#allocation14_spill]]  ;;  %s3595_s21 = smov 112  }
  0x28   : > { %658 = vperm.xlu0 %3383, %v653_v6   ;;  %3003 = vmatprep.subr.bf16.mxu0 %v3388_v5  ;;  %s4455_s23 = sld [smem:[#allocation19_spill]] }
  0x2a   : > { %3116 = vmatpush3.bf16.msra.mxu1 %v3403_v34 }
  0x2b   : > { %3004 = vmatpush3.bf16.msra.mxu0 %v3389_v7  ;;  %3121 = vmatprep.subr.bf16.mxu1 %v3592_v31  ;;  %v3922_v59 = vld [vmem:[%s4446_s28] sm:$0xff]  ;;  %s4453_s28 = sld [smem:[#allocation18_spill]] }
  0x2c   : > { %3005 = vmatprep.subr.bf16.mxu0 %v3390_v8  ;;  %v3853_v42 = vld [vmem:[%s4444_s29] sm:$0xff]   ;;  %v3860_v44 = vld [vmem:[%s4444_s29 + $0x8] sm:$0xff]   ;;  %v3869_v45 = vld [vmem:[%s4444_s29 + $0x10] sm:$0xff]  }
  0x2d   : > { %v3876_v46 = vld [vmem:[%s4444_s29 + $0x18] sm:$0xff]   ;;  %v3883_v47 = vld [vmem:[%s4444_s29 + $0x20] sm:$0xff]   ;;  %v3890_v48 = vld [vmem:[%s4444_s29 + $0x28] sm:$0xff]  }
  0x2e   : > { %v3897_v49 = vld [vmem:[%s4444_s29 + $0x30] sm:$0xff]   ;;  %v3905_v50 = vld [vmem:[%s4444_s29 + $0x38] sm:$0xff]   ;;  %v3917_v58 = vld [vmem:[%s4445_s1] sm:$0xff] }
  0x2f   : > { %3006 = vmatpush3.bf16.msra.mxu0 %v3391_v9 }
  0x30   : > { %3007 = vmatprep.subr.bf16.mxu0 %v3392_v10 }
  0x33   : > { %3008 = vmatpush3.bf16.msra.mxu0 %v3393_v11 }
  0x34   : > { %3009 = vmatprep.subr.bf16.mxu0 %v3394_v12  ;;  %v835_v12 = vshrl.u32 %v654_v18, 7 }
  0x36   : > { %vm3959_vm7 = vcmp.le.s32.totalorder %v3815_v19, %v835_v12 }
  0x37   : > { %3010 = vmatpush3.bf16.msra.mxu0 %v3395_v13 }
  0x38   : > { %3011 = vmatprep.subr.bf16.mxu0 %v3396_v14 }
  0x3b   : > { %3012 = vmatpush3.bf16.msra.mxu0 %v3397_v15 }
  0x3c   : > { %3013 = vmatprep.subr.bf16.mxu0 %v3398_v16 }
  0x3f   : > { %3014 = vmatpush3.bf16.msra.mxu0 %v3399_v17 }
  0x40   : > { %3147 = vmatprep.subr.bf16.mxu0 %v3592_v31 }
  0xa7   : > { %v659_v21 = vpop.permute.xlu0 %658 }
  0xa8   : > { %vm660_vm0 = vcmp.eq.s32.totalorder %v3815_v19, %v659_v21  ;;  %vm661_vm1 = vcmp.eq.s32.totalorder %v656_v20, %v659_v21 }
  0xa9   : > { %vm2895_vm2 = vmpackc.low %vm660_vm0, %vm660_vm0 }
  0xaa   : > { %vm2893_vm3 = vmpackc.low %vm661_vm1, %vm661_vm1 }
  0xab   : > { %2894 = vmatprep.mubr.msk.bf16.mxu0 %vm2893_vm3, %v3591_v22 }
  0xac   : > { %2896 = vmatmul.mubr.msk.bf16.vlgmr.msra.gmra.mrb[0].mxu0 %vm2895_vm2, %v3591_v22 }
  0xad   : > { %3149 = vmatprep.mubr.msk.bf16.mxu0 %vm3593_vm5, %v3592_v31 }
 0x17f   : > { %v3015_v23 = vpop.f32.mrb[0].mxu0 }
 0x180   : > { %v3016_v24 = vpop.f32.mrb[1].mxu0 }
 0x181   : > { %v3819_v25 = vadd.f32 %v3016_v24, %v3015_v23  ;;  %v3018_v26 = vpop.f32.mrb[2].mxu0 }
 0x182   : > { %v3019_v27 = vpop.f32.mrb[3].mxu0 }
 0x183   : > { %v856_v28 = vmul.f32 %v3819_v25, %v3819_v25 }
 0x185   : > { %v858_v29 = vsel %vm857_vm4, %v856_v28, 0.0 }
 0x186   : > { %859 = vadd.xlane.f32.xlu0 %v858_v29 }
 0x213   : > { %v860_v35 = vpop.xlane.xlu0 %859 }
 0x214   : > { %v862_v36 = vmul.f32 0.015625, %v860_v35 }
 0x216   : > { %v863_v37 = vadd.f32 1e-06, %v862_v36 }
 0x218   : > { %3476 = vrsqrt.f32 %v863_v37 }
 0x222   : > { %v3477_v38 = vpop.eup %3476 }
 0x223   : > { %v865_v40 = vmul.f32 %v3477_v38, %v3819_v25 }
 0x225   : > { %v872_v41 = vmul.f32 %v2897_v39, %v865_v40 }
 0x227   : > { %v873_v43 = vpack.c.bf16 %v872_v41, %v872_v41 }
 0x229   : > { %3118 = vmatmul.mubr.msk.bf16.vlgmr.msra.gmra.mrb[0].mxu1 %vm857_vm4, %v873_v43 }
 0x22a   : > { %3122 = vmatpush3.bf16.msra.mxu1 %v3853_v42  ;;  %3137 = vmatprep.mubr.msk.bf16.mxu1 %vm3593_vm5, %v3592_v31 }
 0x22b   : > { %3123 = vmatprep.subr.bf16.mxu1 %v3592_v31 }
 0x22e   : > { %3124 = vmatpush3.bf16.msra.mxu1 %v3860_v44 }
 0x22f   : > { %3125 = vmatprep.subr.bf16.mxu1 %v3592_v31 }
 0x232   : > { %3126 = vmatpush3.bf16.msra.mxu1 %v3869_v45 }
 0x233   : > { %3127 = vmatprep.subr.bf16.mxu1 %v3592_v31 }
 0x236   : > { %3128 = vmatpush3.bf16.msra.mxu1 %v3876_v46 }
 0x237   : > { %3129 = vmatprep.subr.bf16.mxu1 %v3592_v31 }
 0x23a   : > { %3130 = vmatpush3.bf16.msra.mxu1 %v3883_v47 }
 0x23b   : > { %3131 = vmatprep.subr.bf16.mxu1 %v3592_v31 }
 0x23e   : > { %3132 = vmatpush3.bf16.msra.mxu1 %v3890_v48 }
 0x23f   : > { %3133 = vmatprep.subr.bf16.mxu1 %v3592_v31 }
 0x242   : > { %3134 = vmatpush3.bf16.msra.mxu1 %v3897_v49 }
 0x243   : > { %3135 = vmatprep.subr.bf16.mxu1 %v3592_v31 }
 0x246   : > { %3136 = vmatpush3.bf16.msra.mxu1 %v3905_v50 }
 0x247   : > { %3141 = vmatprep.subr.bf16.mxu1 %v3592_v31 }
 0x2fc   : > { %v950_v52 = vpop.f32.mrb[0].mxu1 }
 0x2fd   : > { %v951_v53 = vadd.f32 %v2898_v51, %v950_v52  ;;  %v3119_v54 = vpop.f32.mrb[1].mxu1 }
 0x2fe   : > { %v953_v55 = vpop.f32.mrb[2].mxu1 }
 0x2ff   : > { %v957_v56 = vpack.c.bf16 %v951_v53, %v951_v53  ;;  %v3120_v57 = vpop.f32.mrb[3].mxu1  ;;  %v956_v61 = vmul.f32 %v951_v53, %v3917_v58 }
 0x301   : > { %3138 = vmatmul.mubr.bf16.vlgmr.msra.gmra.mrb[4].mxu1 %v957_v56 }
 0x302   : > { %3143 = vmatprep.mubr.msk.bf16.mxu1 %vm3593_vm5, %v3592_v31 }
 0x3d4   : > { %v1040_v60 = vpop.f32.mrb[4].mxu1 }
 0x3d5   : > { %v1046_v62 = vmul.f32 %v1040_v60, %v3922_v59  ;;  %v3139_v63 = vpop.f32.mrb[5].mxu1 }
 0x3d6   : > { %v1043_v1 = vpop.f32.mrb[6].mxu1 }
 0x3d7   : > { %v1047_v2 = vadd.f32 %v1046_v62, %v956_v61  ;;  %v3140_v3 = vpop.f32.mrb[7].mxu1 }
 0x3d9   : > { %v3926_v4 = vpack.c.bf16 %v1047_v2, %v1047_v2 }
 0x3db   : > { %1050 = vrot.lane.b32.xlu1 %v3926_v4, %s3594_s2 }
 0x3df   : > { %1099 = vrot.lane.b32.xlu1 %v3926_v4, %s3595_s21 }
 0x3e3   : > { %1146 = vrot.lane.b32.xlu1 %v3926_v4, %s4422_s27 }
 0x3e7   : > { %1144 = vrot.lane.b32.xlu1 %v3926_v4, %s3597_s19 }
 0x3eb   : > { %1194 = vrot.lane.b32.xlu1 %v3926_v4, %s4417_s5 }
 0x44d   : > { %v1051_v5 = vpop.permute.xlu1 %1050 }
 0x44e   : > { %v1057_v6 = vsel %vm1052_vm6, %v1051_v5, 0 }
 0x44f   : > { %3142 = vmatpush3.bf16.xpose.msra.mxu1 %v1057_v6  ;;  %3148 = vmatpush3.bf16.xpose.msra.mxu0 %v1057_v6 }
 0x450   : > { %3153 = vmatprep.subr.bf16.mxu0 %v3592_v31  ;;  %3159 = vmatprep.subr.bf16.mxu1 %v3592_v31 }
 0x451   : > { %v1100_v7 = vpop.permute.xlu1 %1099 }
 0x455   : > { %v1147_v8 = vpop.permute.xlu1 %1146 }
 0x456   : > { %v1152_v9 = vsel %vm1052_vm6, %v1147_v8, 0  ;;  %3144 = vmatmul.mubr.msk.bf16.vlgmr.msra.gmra.mrb[8].mxu1 %vm1052_vm6, %v3926_v4  ;;  %3150 = vmatmul.mubr.msk.bf16.vlgmr.msra.gmra.mrb[4].mxu0 %vm1052_vm6, %v1100_v7 }
 0x457   : > { %3154 = vmatpush3.bf16.xpose.msra.mxu0 %v1152_v9  ;;  %3160 = vmatpush3.bf16.xpose.msra.mxu1 %v1152_v9 }
 0x458   : > { %3155 = vmatprep.mubr.msk.bf16.mxu0 %vm3593_vm5, %v3592_v31  ;;  %3161 = vmatprep.mubr.msk.bf16.mxu1 %vm3593_vm5, %v3592_v31 }
 0x459   : > { %v1145_v10 = vpop.permute.xlu1 %1144  ;;  %3165 = vmatprep.subr.bf16.mxu0 %v3592_v31  ;;  %3171 = vmatprep.subr.bf16.mxu1 %v3592_v31 }
 0x45d   : > { %v1195_v11 = vpop.permute.xlu1 %1194 }
 0x45e   : > { %3156 = vmatmul.mubr.msk.bf16.vlgmr.msra.gmra.mrb[8].mxu0 %vm1052_vm6, %v1145_v10  ;;  %3162 = vmatmul.mubr.msk.bf16.vlgmr.msra.gmra.mrb[12].mxu1 %vm1052_vm6, %v1195_v11 }
 0x45f   : > { %3167 = vmatprep.mubr.msk.bf16.mxu0 %vm3593_vm5, %v3592_v31  ;;  %3173 = vmatprep.mubr.msk.bf16.mxu1 %vm3593_vm5, %v3592_v31 }
 0x529   : > { %v1093_v14 = vpop.f32.mrb[8].mxu1  ;;  %v1138_v15 = vpop.f32.mrb[4].mxu0 }
 0x52a   : > { %v1239_v16 = vmul.f32 0.25, %v1093_v14  ;;  %v1240_v17 = vmul.f32 0.25, %v1138_v15  ;;  %v3145_v20 = vpop.f32.mrb[9].mxu1  ;;  %v3151_v21 = vpop.f32.mrb[5].mxu0 }
 0x52b   : > { %v1096_v22 = vpop.f32.mrb[10].mxu1  ;;  %v1141_v23 = vpop.f32.mrb[6].mxu0 }
 0x52c   : > { %v3146_v24 = vpop.f32.mrb[11].mxu1  ;;  %v3152_v26 = vpop.f32.mrb[7].mxu0  ;;  %v1244_v27 = vsel %vm3959_vm7, %v1240_v17, -1e+30  ;;  %v1243_v18 = vsel %vm3959_vm7, %v1239_v16, -1e+30 }
 0x52d   : > { %v1251_v19 = vsel %vm1247_vm8, %v1244_v27, -inf  ;;  %v1248_v28 = vsel %vm1247_vm8, %v1243_v18, -inf }
 0x52e   : > { %1252 = vmax.xlane.f32.xlu0 %v1251_v19  ;;  %1249 = vmax.xlane.f32.xlu1 %v1248_v28 }
 0x531   : > { %v1188_v29 = vpop.f32.mrb[8].mxu0  ;;  %v1233_v30 = vpop.f32.mrb[12].mxu1 }
 0x532   : > { %v1241_v32 = vmul.f32 0.25, %v1188_v29  ;;  %v1242_v33 = vmul.f32 0.25, %v1233_v30  ;;  %v3157_v34 = vpop.f32.mrb[9].mxu0  ;;  %v3163_v35 = vpop.f32.mrb[13].mxu1 }
 0x533   : > { %v1191_v36 = vpop.f32.mrb[10].mxu0  ;;  %v1236_v37 = vpop.f32.mrb[14].mxu1  ;;  %v3412_v34 = vld [vmem:[%s4393_s9] sm:$0xff]   ;;  %v3413_v35 = vld [vmem:[%s4393_s9 + $0x8] sm:$0xff]  }
 0x534   : > { %v3158_v38 = vpop.f32.mrb[11].mxu0  ;;  %v3164_v39 = vpop.f32.mrb[15].mxu1  ;;  %v1245_v40 = vsel %vm3959_vm7, %v1241_v32, -1e+30  ;;  %v1246_v43 = vsel %vm3959_vm7, %v1242_v33, -1e+30 }
 0x535   : > { %v1254_v41 = vsel %vm1247_vm8, %v1245_v40, -inf  ;;  %v1257_v51 = vsel %vm1247_vm8, %v1246_v43, -inf  ;;  %v3414_v36 = vld [vmem:[%s4393_s9 + $0x10] sm:$0xff]   ;;  %v3415_v37 = vld [vmem:[%s4393_s9 + $0x18] sm:$0xff]  }
 0x536   : > { %1255 = vmax.xlane.f32.xlu0 %v1254_v41 }
 0x53a   : > { %1258 = vmax.xlane.f32.xlu0 %v1257_v51 }
 0x5bb   : > { %v1253_v52 = vpop.xlane.xlu0 %1252  ;;  %v1250_v53 = vpop.xlane.xlu1 %1249 }
 0x5bc   : > { %v1261_v54 = vsub.f32 %v1244_v27, %v1253_v52  ;;  %v1260_v55 = vsub.f32 %v1243_v18, %v1250_v53 }
 0x5be   : > { %v1264_v56 = vmul.f32 1.442695, %v1260_v55  ;;  %v1266_v57 = vmul.f32 1.442695, %v1261_v54 }
 0x5c0   : > { %3478 = vpow2.f32 %v1264_v56 }
 0x5c1   : > { %3480 = vpow2.f32 %v1266_v57 }
 0x5c3   : > { %v1256_v60 = vpop.xlane.xlu0 %1255 }
 0x5c4   : > { %v1262_v61 = vsub.f32 %v1245_v40, %v1256_v60 }
 0x5c6   : > { %v1268_v62 = vmul.f32 1.442695, %v1262_v61 }
 0x5c7   : > { %v1259_v63 = vpop.xlane.xlu0 %1258 }
 0x5c8   : > { %3482 = vpow2.f32 %v1268_v62  ;;  %v1263_v1 = vsub.f32 %v1246_v43, %v1259_v63 }
 0x5ca   : > { %v1270_v2 = vmul.f32 1.442695, %v1263_v1  ;;  %v3479_v3 = vpop.eup %3478 }
 0x5cb   : > { %v1272_v5 = vsel %vm1247_vm8, %v3479_v3, 0.0  ;;  %v3481_v6 = vpop.eup %3480 }
 0x5cc   : > { %3484 = vpow2.f32 %v1270_v2  ;;  %1273 = vadd.xlane.f32.xlu0 %v1272_v5  ;;  %v1275_v7 = vsel %vm1247_vm8, %v3481_v6, 0.0 }
 0x5d0   : > { %1276 = vadd.xlane.f32.xlu0 %v1275_v7 }
 0x5d2   : > { %v3483_v8 = vpop.eup %3482 }
 0x5d3   : > { %v1278_v9 = vsel %vm1247_vm8, %v3483_v8, 0.0 }
 0x5d4   : > { %1279 = vadd.xlane.f32.xlu0 %v1278_v9 }
 0x5d6   : > { %v3485_v10 = vpop.eup %3484 }
 0x5d7   : > { %v1281_v11 = vsel %vm1247_vm8, %v3485_v10, 0.0 }
 0x5d8   : > { %1282 = vadd.xlane.f32.xlu1 %v1281_v11 }
 0x5e9   : > { %1388 = vrot.lane.b32.xlu1 %v3926_v4, %s4420_s22 }
 0x5ea   : > { %1294 = vrot.lane.b32.xlu0 %v3926_v4, %s4418_s0 }
 0x659   : > { %v1274_v12 = vpop.xlane.xlu0 %1273 }
 0x65a   : > { %3486 = vrcp.f32 %v1274_v12 }
 0x65d   : > { %v1277_v14 = vpop.xlane.xlu0 %1276 }
 0x65e   : > { %3488 = vrcp.f32 %v1277_v14 }
 0x661   : > { %v1280_v15 = vpop.xlane.xlu0 %1279 }
 0x662   : > { %3490 = vrcp.f32 %v1280_v15 }
 0x664   : > { %v3487_v20 = vpop.eup %3486 }
 0x665   : > { %v1283_v16 = vpop.xlane.xlu1 %1282  ;;  %v1295_v17 = vpop.permute.xlu0 %1294  ;;  %v1288_v4 = vmul.f32 %v3487_v20, %v3479_v3  ;;  %v3416_v20 = vld [vmem:[%s4394_s10] ss:$8 sps:$4 sm:$0xff]  }
 0x666   : > { %3492 = vrcp.f32 %v1283_v16  ;;  %v1301_v21 = vsel %vm1299_vm9, %v1295_v17, 0  ;;  %v3418_v17 = vld [vmem:[%s4394_s10 + $0x4] ss:$8 sps:$4 sm:$0xff]  }
 0x667   : > { %3166 = vmatpush3.bf16.msra.mxu0 %v1301_v21  ;;  %3172 = vmatpush3.bf16.msra.mxu1 %v1301_v21  ;;  %v3419_v21 = vld [vmem:[%s4394_s10 + $0x10] ss:$8 sps:$4 sm:$0xff]  }
 0x668   : > { %v3489_v22 = vpop.eup %3488  ;;  %3177 = vmatprep.subr.bf16.mxu0 %v3592_v31  ;;  %3183 = vmatprep.subr.bf16.mxu1 %v3592_v31 }
 0x669   : > { %v1289_v23 = vmul.f32 %v3489_v22, %v3481_v6  ;;  %v1389_v24 = vpop.permute.xlu1 %1388  ;;  %v3424_v22 = vld [vmem:[%s4394_s10 + $0x24] ss:$8 sps:$4 sm:$0xff]  }
 0x66a   : > { %v1394_v18 = vsel %vm1299_vm9, %v1389_v24, 0  ;;  %v3427_v24 = vld [vmem:[%s4394_s10 + $0x34] ss:$8 sps:$4 sm:$0xff]  }
 0x66b   : > { %v1292_v26 = vpack.c.bf16 %v1289_v23, %v1288_v4  ;;  %v3422_v4 = vld [vmem:[%s4394_s10 + $0x20] ss:$8 sps:$4 sm:$0xff]   ;;  %v3425_v23 = vld [vmem:[%s4394_s10 + $0x30] ss:$8 sps:$4 sm:$0xff]  }
 0x66c   : > { %v3491_v27 = vpop.eup %3490 }
 0x66d   : > { %3168 = vmatmul.mubr.msk.bf16.vlgmr.msra.gmra.mrb[12].mxu0 %vm1247_vm8, %v1292_v26  ;;  %v1344_v19 = vrot.slane %v1292_v26, 4  ;;  %v1290_v29 = vmul.f32 %v3491_v27, %v3483_v8 }
 0x66e   : > { %3178 = vmatpush3.bf16.msra.mxu0 %v1394_v18  ;;  %3179 = vmatprep.mubr.msk.bf16.mxu0 %vm3593_vm5, %v3592_v31 }
 0x66f   : > { %3174 = vmatmul.mubr.msk.bf16.vlgmr.msra.gmra.mrb[16].mxu1 %vm1247_vm8, %v1344_v19  ;;  %3189 = vmatprep.subr.bf16.mxu0 %v3592_v31 }
 0x670   : > { %v3493_v28 = vpop.eup %3492  ;;  %3184 = vmatpush3.bf16.msra.mxu1 %v1394_v18  ;;  %3185 = vmatprep.mubr.msk.bf16.mxu1 %vm3593_vm5, %v3592_v31 }
 0x671   : > { %v1291_v30 = vmul.f32 %v3493_v28, %v3485_v10  ;;  %1643 = vmatprep.subr.bf16.mxu1 %v3418_v17  ;;  %v2925_v28 = vld [vmem:[%s4390_s6] ss:$0 sm:$0xff] }
 0x673   : > { %v1293_v32 = vpack.c.bf16 %v1291_v30, %v1290_v29 }
 0x675   : > { %v1437_v33 = vrot.slane %v1293_v32, 4  ;;  %3180 = vmatmul.mubr.msk.bf16.vlgmr.msra.gmra.mrb[16].mxu0 %vm1247_vm8, %v1293_v32 }
 0x676   : > { %3197 = vmatprep.mubr.msk.bf16.mxu0 %vm3593_vm5, %v3592_v31  ;;  %3190 = vmatpush3.bf16.msra.mxu0 %v3412_v34  ;;  %v3429_v34 = vld [vmem:[%s4395_s11 + $0x8] sm:$0xff]  }
 0x677   : > { %3186 = vmatmul.mubr.msk.bf16.vlgmr.msra.gmra.mrb[20].mxu1 %vm1247_vm8, %v1437_v33  ;;  %3191 = vmatprep.subr.bf16.mxu0 %v3592_v31  ;;  %v3428_v33 = vld [vmem:[%s4395_s11] sm:$0xff]  }
 0x678   : > { %1675 = vmatprep.mubr.bf16.mxu1 %v3590_v0  ;;  %1644 = vmatpush1.bf16.msra.mxu1 %v3416_v20 }
 0x67a   : > { %3192 = vmatpush3.bf16.msra.mxu0 %v3413_v35  ;;  %v3430_v35 = vld [vmem:[%s4395_s11 + $0x10] sm:$0xff]  }
 0x67b   : > { %3193 = vmatprep.subr.bf16.mxu0 %v3592_v31 }
 0x67e   : > { %3194 = vmatpush3.bf16.msra.mxu0 %v3414_v36  ;;  %v3431_v36 = vld [vmem:[%s4395_s11 + $0x18] sm:$0xff]  }
 0x67f   : > { %3195 = vmatprep.subr.bf16.mxu0 %v3592_v31 }
 0x682   : > { %3196 = vmatpush3.bf16.msra.mxu0 %v3415_v37  ;;  %v3432_v37 = vld [vmem:[%s4395_s11 + $0x20] sm:$0xff]  }
 0x683   : > { %3201 = vmatprep.subr.bf16.mxu0 %v3592_v31 }
 0x740   : > { %v1337_v38 = vpop.f32.mrb[12].mxu0 }
 0x741   : > { %v3169_v39 = vpop.f32.mrb[13].mxu0 }
 0x742   : > { %v1340_v40 = vpop.f32.mrb[14].mxu0  ;;  %v1382_v41 = vpop.f32.mrb[16].mxu1  ;;  %v3434_v39 = vld [vmem:[%s4395_s11 + $0x30] sm:$0xff]  }
 0x743   : > { %v3170_v43 = vpop.f32.mrb[15].mxu0  ;;  %1482 = vrot.lane.b32.xlu1 %v1382_v41, %s4420_s22  ;;  %v3175_v51 = vpop.f32.mrb[17].mxu1  ;;  %v3435_v40 = vld [vmem:[%s4395_s11 + $0x38] sm:$0xff]   ;;  %s4450_s22 = smov 80  }
 0x744   : > { %v1385_v52 = vpop.f32.mrb[18].mxu1 }
 0x745   : > { %v3176_v53 = vpop.f32.mrb[19].mxu1 }
 0x748   : > { %v1430_v54 = vpop.f32.mrb[16].mxu0 }
 0x749   : > { %1486 = vrot.lane.b32.xlu0 %v1430_v54, %s4418_s0  ;;  %v3181_v55 = vpop.f32.mrb[17].mxu0  ;;  %s2998_s0 = sshll.u32 %s3733_s3, 8  ;;  %s3601_s3 = smov [#allocation2]  }
 0x74a   : > { %v1433_v56 = vpop.f32.mrb[18].mxu0  ;;  %v1475_v57 = vpop.f32.mrb[20].mxu1  ;;  %s4344_s1 = scalar_lea.hbm %s4455_s23, %s2998_s0 }
 0x74b   : > { %v3182_v60 = vpop.f32.mrb[19].mxu0  ;;  %1490 = vrot.lane.b32.xlu1 %v1475_v57, %s4422_s27  ;;  %v3187_v61 = vpop.f32.mrb[21].mxu1  ;;  %s4449_s27 = smov 48  }
 0x74c   : > { %v1478_v62 = vpop.f32.mrb[22].mxu1 }
 0x74d   : > { %v3188_v63 = vpop.f32.mrb[23].mxu1 }
 0x7b5   : > { %v1483_v1 = vpop.permute.xlu1 %1482 }
 0x7b6   : > { %v1493_v2 = vsel %vm1052_vm6, %v1337_v38, %v1483_v1  ;;  %v3433_v38 = vld [vmem:[%s4395_s11 + $0x28] sm:$0xff]  }
 0x7bb   : > { %v1487_v3 = vpop.permute.xlu0 %1486 }
 0x7bc   : > { %v1495_v5 = vsel %vm1494_vm10, %v1493_v2, %v1487_v3 }
 0x7bd   : > { %v1491_v6 = vpop.permute.xlu1 %1490 }
 0x7be   : > { %v1497_v7 = vsel %vm1496_vm11, %v1495_v5, %v1491_v6 }
 0x7bf   : > { %v1498_v8 = vpack.c.bf16 %v1497_v7, %v1497_v7  ;;  %v3436_v7 = vld [vmem:[%s4398_s14] sm:$0xff]  }
 0x7c1   : > { %3198 = vmatmul.mubr.msk.bf16.vlgmr.msra.gmra.mrb[20].mxu0 %vm857_vm4, %v1498_v8  ;;  %v3437_v8 = vld [vmem:[%s4398_s14 + $0x8] sm:$0xff]  }
 0x7c2   : > { %3217 = vmatprep.mubr.msk.bf16.mxu0 %vm3593_vm5, %v3592_v31  ;;  %3202 = vmatpush3.bf16.msra.mxu0 %v3428_v33 }
 0x7c3   : > { %3203 = vmatprep.subr.bf16.mxu0 %v3592_v31 }
 0x7c6   : > { %3204 = vmatpush3.bf16.msra.mxu0 %v3429_v34 }
 0x7c7   : > { %3205 = vmatprep.subr.bf16.mxu0 %v3592_v31 }
 0x7ca   : > { %3206 = vmatpush3.bf16.msra.mxu0 %v3430_v35 }
 0x7cb   : > { %3207 = vmatprep.subr.bf16.mxu0 %v3592_v31 }
 0x7ce   : > { %3208 = vmatpush3.bf16.msra.mxu0 %v3431_v36 }
 0x7cf   : > { %3209 = vmatprep.subr.bf16.mxu0 %v3592_v31 }
 0x7d2   : > { %3210 = vmatpush3.bf16.msra.mxu0 %v3432_v37 }
 0x7d3   : > { %3211 = vmatprep.subr.bf16.mxu0 %v3592_v31 }
 0x7d6   : > { %3212 = vmatpush3.bf16.msra.mxu0 %v3433_v38 }
 0x7d7   : > { %3213 = vmatprep.subr.bf16.mxu0 %v3592_v31 }
 0x7da   : > { %3214 = vmatpush3.bf16.msra.mxu0 %v3434_v39 }
 0x7db   : > { %3215 = vmatprep.subr.bf16.mxu0 %v3592_v31 }
 0x7de   : > { %3216 = vmatpush3.bf16.msra.mxu0 %v3435_v40 }
 0x7df   : > { %3253 = vmatprep.subr.bf16.mxu0 %v3592_v31 }
 0x894   : > { %v1568_v9 = vpop.f32.mrb[20].mxu0 }
 0x895   : > { %v4025_v10 = vadd.f32 %v3819_v25, %v1568_v9  ;;  %v3199_v11 = vpop.f32.mrb[21].mxu0  ;;  %v3421_v25 = vld [vmem:[%s4394_s10 + $0x14] ss:$8 sps:$4 sm:$0xff]  }
 0x896   : > { %v1571_v12 = vpop.f32.mrb[22].mxu0  ;;  %1645 = vmatprep.subr.bf16.mxu1 %v3421_v25  ;;  %v3438_v9 = vld [vmem:[%s4398_s14 + $0x10] sm:$0xff]  }
 0x897   : > { %v3200_v14 = vpop.f32.mrb[23].mxu0  ;;  %v1576_v15 = vmul.f32 %v4025_v10, %v4025_v10  ;;  %1646 = vmatpush1.bf16.msra.mxu1 %v3419_v21 }
 0x898   : > { %1647 = vmatprep.subr.bf16.mxu1 %v3424_v22 }
 0x899   : > { %v1577_v16 = vsel %vm857_vm4, %v1576_v15, 0.0 }
 0x89a   : > { %1578 = vadd.xlane.f32.xlu0 %v1577_v16  ;;  %v2944_v16 = vld [vmem:[%s4396_s12] ss:$0 sm:$0xff] }
 0x89b   : > { %1648 = vmatpush1.bf16.msra.mxu1 %v3422_v4 }
 0x89c   : > { %1649 = vmatprep.subr.bf16.mxu1 %v3427_v24 }
 0x89f   : > { %1650 = vmatpush1.bf16.msra.mxu1 %v3425_v23 }
 0x8a0   : > { %3221 = vmatprep.subr.bf16.mxu1 %v3592_v31 }
 0x927   : > { %v1579_v26 = vpop.xlane.xlu0 %1578 }
 0x928   : > { %v1580_v27 = vmul.f32 0.015625, %v1579_v26 }
 0x92a   : > { %v1581_v18 = vadd.f32 1e-06, %v1580_v27 }
 0x92c   : > { %3494 = vrsqrt.f32 %v1581_v18 }
 0x936   : > { %v3495_v19 = vpop.eup %3494 }
 0x937   : > { %v1583_v29 = vmul.f32 %v3495_v19, %v4025_v10 }
 0x939   : > { %v1590_v30 = vmul.f32 %v2925_v28, %v1583_v29 }
 0x93b   : > { %v1591_v32 = vpack.c.bf16 %v1590_v30, %v1590_v30 }
 0x93d   : > { %2934 = vmatmul.mubr.msk.bf16.vlgmr.msra.gmra.mrb[24].mxu1 %vm857_vm4, %v1591_v32 }
 0x93e   : > { %3229 = vmatprep.mubr.msk.bf16.mxu1 %vm3593_vm5, %v3592_v31  ;;  %3222 = vmatpush3.bf16.msra.mxu1 %v3436_v7 }
 0x93f   : > { %3223 = vmatprep.subr.bf16.mxu1 %v3592_v31 }
 0x942   : > { %3224 = vmatpush3.bf16.msra.mxu1 %v3437_v8 }
 0x943   : > { %3225 = vmatprep.subr.bf16.mxu1 %v3592_v31 }
 0x946   : > { %3226 = vmatpush3.bf16.msra.mxu1 %v3438_v9 }
 0x947   : > { %3227 = vmatprep.subr.bf16.mxu1 %v3592_v31 }
 0xa10   : > { %v1677_v41 = vpop.f32.mrb[24].mxu1 }
 0xa11   : > { %v2935_v43 = vmul.f32 -1.442695, %v1677_v41  ;;  %v1679_v51 = vpop.f32.mrb[25].mxu1 }
 0xa12   : > { %v1681_v52 = vpop.f32.mrb[26].mxu1 }
 0xa13   : > { %3496 = vpow2.f32 %v2935_v43  ;;  %v1682_v53 = vpop.f32.mrb[27].mxu1 }
 0xa1d   : > { %v3497_v54 = vpop.eup %3496 }
 0xa1e   : > { %v1687_v55 = vadd.f32 1.0, %v3497_v54 }
 0xa20   : > { %3498 = vrcp.f32 %v1687_v55 }
 0xa2a   : > { %v3499_v56 = vpop.eup %3498 }
 0xa2b   : > { %v1690_v57 = vmul.f32 %v3499_v56, %v1677_v41 }
 0xa2d   : > { %v1691_v60 = vmul.f32 %v1690_v57, %v1679_v51 }
 0xa2f   : > { %v1692_v61 = vpack.c.bf16 %v1691_v60, %v1691_v60 }
 0xa31   : > { %3218 = vmatmul.mubr.bf16.vlgmr.msra.gmra.mrb[24].mxu0 %v1692_v61 }
 0xa32   : > { %3255 = vmatprep.mubr.msk.bf16.mxu0 %vm3593_vm5, %v3592_v31 }
 0xb04   : > { %v1791_v62 = vpop.f32.mrb[24].mxu0 }
 0xb05   : > { %v4097_v63 = vadd.f32 %v1791_v62, %v4025_v10  ;;  %v3219_v1 = vpop.f32.mrb[25].mxu0  ;;  %v3439_v10 = vld [vmem:[%s4398_s14 + $0x18] sm:$0xff]  }
 0xb06   : > { %v1794_v2 = vpop.f32.mrb[26].mxu0  ;;  %3228 = vmatpush3.bf16.msra.mxu1 %v3439_v10 }
 0xb07   : > { %v3220_v3 = vpop.f32.mrb[27].mxu0  ;;  %v1799_v5 = vmul.f32 %v4097_v63, %v4097_v63  ;;  %3233 = vmatprep.subr.bf16.mxu1 %v3592_v31 }
 0xb09   : > { %v1800_v6 = vsel %vm857_vm4, %v1799_v5, 0.0 }
 0xb0a   : > { %1801 = vadd.xlane.f32.xlu1 %v1800_v6 }
 0xb97   : > { %v1802_v11 = vpop.xlane.xlu1 %1801 }
 0xb98   : > { %v1803_v12 = vmul.f32 0.015625, %v1802_v11 }
 0xb9a   : > { %v1804_v14 = vadd.f32 1e-06, %v1803_v12 }
 0xb9c   : > { %3500 = vrsqrt.f32 %v1804_v14 }
 0xba6   : > { %v3501_v15 = vpop.eup %3500 }
 0xba7   : > { %v1806_v17 = vmul.f32 %v3501_v15, %v4097_v63 }
 0xba9   : > { %v1813_v20 = vmul.f32 %v2944_v16, %v1806_v17 }
 0xbab   : > { %v1814_v25 = vpack.c.bf16 %v1813_v20, %v1813_v20 }
 0xbad   : > { %3230 = vmatmul.mubr.msk.bf16.vlgmr.msra.gmra.mrb[28].mxu1 %vm857_vm4, %v1814_v25 }
 0xbae   : > { %3234 = vmatpush3.bf16.msra.mxu1 %v3853_v42  ;;  %3249 = vmatprep.mubr.msk.bf16.mxu1 %vm3593_vm5, %v3592_v31  ;;  %v2945_v42 = vld [vmem:[%s4399_s15] ss:$0 sm:$0xff] }
 0xbaf   : > { %3235 = vmatprep.subr.bf16.mxu1 %v3592_v31 }
 0xbb2   : > { %3236 = vmatpush3.bf16.msra.mxu1 %v3860_v44 }
 0xbb3   : > { %3237 = vmatprep.subr.bf16.mxu1 %v3592_v31 }
 0xbb6   : > { %3238 = vmatpush3.bf16.msra.mxu1 %v3869_v45 }
 0xbb7   : > { %3239 = vmatprep.subr.bf16.mxu1 %v3592_v31 }
 0xbba   : > { %3240 = vmatpush3.bf16.msra.mxu1 %v3876_v46 }
 0xbbb   : > { %3241 = vmatprep.subr.bf16.mxu1 %v3592_v31 }
 0xbbe   : > { %3242 = vmatpush3.bf16.msra.mxu1 %v3883_v47 }
 0xbbf   : > { %3243 = vmatprep.subr.bf16.mxu1 %v3592_v31 }
 0xbc2   : > { %3244 = vmatpush3.bf16.msra.mxu1 %v3890_v48 }
 0xbc3   : > { %3245 = vmatprep.subr.bf16.mxu1 %v3592_v31 }
 0xbc6   : > { %3246 = vmatpush3.bf16.msra.mxu1 %v3897_v49 }
 0xbc7   : > { %3247 = vmatprep.subr.bf16.mxu1 %v3592_v31 }
 0xbca   : > { %3248 = vmatpush3.bf16.msra.mxu1 %v3905_v50 }
 0xbcb   : > { %3271 = vmatprep.subr.bf16.mxu1 %v3592_v31 }
 0xc80   : > { %v1891_v44 = vpop.f32.mrb[28].mxu1 }
 0xc81   : > { %v1892_v45 = vadd.f32 %v2945_v42, %v1891_v44  ;;  %v3231_v46 = vpop.f32.mrb[29].mxu1 }
 0xc82   : > { %v1894_v47 = vpop.f32.mrb[30].mxu1 }
 0xc83   : > { %v1898_v21 = vpack.c.bf16 %v1892_v45, %v1892_v45  ;;  %v3232_v48 = vpop.f32.mrb[31].mxu1  ;;  %v1897_v22 = vmul.f32 %v1892_v45, %v3917_v58 }
 0xc85   : > { %3250 = vmatmul.mubr.bf16.vlgmr.msra.gmra.mrb[32].mxu1 %v1898_v21 }
 0xc86   : > { %3273 = vmatprep.mubr.msk.bf16.mxu1 %vm3593_vm5, %v3592_v31 }
 0xd58   : > { %v1933_v49 = vpop.f32.mrb[32].mxu1 }
 0xd59   : > { %v1939_v50 = vmul.f32 %v1933_v49, %v3922_v59  ;;  %v3251_v4 = vpop.f32.mrb[33].mxu1 }
 0xd5a   : > { %v1936_v23 = vpop.f32.mrb[34].mxu1 }
 0xd5b   : > { %v1940_v24 = vadd.f32 %v1939_v50, %v1897_v22  ;;  %v3252_v26 = vpop.f32.mrb[35].mxu1 }
 0xd5d   : > { %v4148_v27 = vpack.c.bf16 %v1940_v24, %v1940_v24 }
 0xd5f   : > { %1991 = vrot.lane.b32.xlu1 %v4148_v27, %s3595_s21  ;;  %1943 = vrot.lane.b32.xlu0 %v4148_v27, %s3594_s2  ;;  %s4451_s2 = smov 16   ;;  %s4452_s21 = smov 32  }
 0xd63   : > { %2036 = vrot.lane.b32.xlu1 %v4148_v27, %s3597_s19  ;;  %2038 = vrot.lane.b32.xlu0 %v4148_v27, %s4449_s27 }
 0xd67   : > { %2086 = vrot.lane.b32.xlu0 %v4148_v27, %s4450_s22 }
 0xdd1   : > { %v1944_v58 = vpop.permute.xlu0 %1943  ;;  %v1992_v29 = vpop.permute.xlu1 %1991 }
 0xdd2   : > { %v1949_v59 = vsel %vm1052_vm6, %v1944_v58, 0 }
 0xdd3   : > { %3254 = vmatpush3.bf16.xpose.msra.mxu0 %v1949_v59 }
 0xdd4   : > { %3259 = vmatprep.subr.bf16.mxu0 %v3592_v31 }
 0xdd5   : > { %v2039_v18 = vpop.permute.xlu0 %2038  ;;  %v2037_v30 = vpop.permute.xlu1 %2036 }
 0xdd6   : > { %v2044_v19 = vsel %vm1052_vm6, %v2039_v18, 0 }
 0xdd7   : > { %3272 = vmatpush3.bf16.xpose.msra.mxu1 %v2044_v19 }
 0xdd8   : > { %3283 = vmatprep.subr.bf16.mxu1 %v3592_v31 }
 0xdd9   : > { %v2087_v28 = vpop.permute.xlu0 %2086 }
 0xdda   : > { %3256 = vmatmul.mubr.msk.bf16.vlgmr.msra.gmra.mrb[28].mxu0 %vm1052_vm6, %v4148_v27 }
 0xddb   : > { %3260 = vmatpush3.bf16.xpose.msra.mxu0 %v1949_v59  ;;  %3261 = vmatprep.mubr.msk.bf16.mxu0 %vm3593_vm5, %v3592_v31 }
 0xddc   : > { %3265 = vmatprep.subr.bf16.mxu0 %v3592_v31 }
 0xdde   : > { %3274 = vmatmul.mubr.msk.bf16.vlgmr.msra.gmra.mrb[36].mxu1 %vm1052_vm6, %v2087_v28 }
 0xddf   : > { %3285 = vmatprep.mubr.msk.bf16.mxu1 %vm3593_vm5, %v3592_v31 }
 0xde2   : > { %3262 = vmatmul.mubr.msk.bf16.vlgmr.msra.gmra.mrb[32].mxu0 %vm1052_vm6, %v1992_v29 }
 0xde3   : > { %3266 = vmatpush3.bf16.xpose.msra.mxu0 %v2044_v19  ;;  %3267 = vmatprep.mubr.msk.bf16.mxu0 %vm3593_vm5, %v3592_v31 }
 0xde4   : > { %3277 = vmatprep.subr.bf16.mxu0 %v3592_v31 }
 0xdea   : > { %3268 = vmatmul.mubr.msk.bf16.vlgmr.msra.gmra.mrb[36].mxu0 %vm1052_vm6, %v2037_v30 }
 0xdeb   : > { %3279 = vmatprep.mubr.msk.bf16.mxu0 %vm3593_vm5, %v3592_v31 }
 0xead   : > { %v1985_v32 = vpop.f32.mrb[28].mxu0 }
 0xeae   : > { %v2131_v33 = vmul.f32 0.25, %v1985_v32  ;;  %v3257_v34 = vpop.f32.mrb[29].mxu0 }
 0xeaf   : > { %v1988_v35 = vpop.f32.mrb[30].mxu0 }
 0xeb0   : > { %v3258_v36 = vpop.f32.mrb[31].mxu0  ;;  %v2135_v37 = vsel %vm3959_vm7, %v2131_v33, -1e+30 }
 0xeb1   : > { %v2125_v38 = vpop.f32.mrb[36].mxu1  ;;  %v2139_v39 = vsel %vm1247_vm8, %v2135_v37, -inf }
 0xeb2   : > { %v2134_v40 = vmul.f32 0.25, %v2125_v38  ;;  %2140 = vmax.xlane.f32.xlu1 %v2139_v39  ;;  %v3275_v41 = vpop.f32.mrb[37].mxu1  ;;  %v3440_v39 = vld [vmem:[%s4400_s16] sm:$0xff]  }
 0xeb3   : > { %v2128_v43 = vpop.f32.mrb[38].mxu1  ;;  %v3442_v41 = vld [vmem:[%s4400_s16 + $0x10] sm:$0xff]  }
 0xeb4   : > { %v3276_v51 = vpop.f32.mrb[39].mxu1  ;;  %v2138_v52 = vsel %vm3959_vm7, %v2134_v40, -1e+30  ;;  %v3441_v40 = vld [vmem:[%s4400_s16 + $0x8] sm:$0xff]   ;;  %v3443_v43 = vld [vmem:[%s4400_s16 + $0x18] sm:$0xff]  }
 0xeb5   : > { %v2030_v53 = vpop.f32.mrb[32].mxu0  ;;  %v2148_v54 = vsel %vm1247_vm8, %v2138_v52, -inf }
 0xeb6   : > { %v2132_v55 = vmul.f32 0.25, %v2030_v53  ;;  %v3263_v56 = vpop.f32.mrb[33].mxu0  ;;  %2149 = vmax.xlane.f32.xlu1 %v2148_v54 }
 0xeb7   : > { %v2033_v57 = vpop.f32.mrb[34].mxu0 }
 0xeb8   : > { %v3264_v60 = vpop.f32.mrb[35].mxu0  ;;  %v2136_v61 = vsel %vm3959_vm7, %v2132_v55, -1e+30 }
 0xeb9   : > { %v2142_v62 = vsel %vm1247_vm8, %v2136_v61, -inf }
 0xeba   : > { %2143 = vmax.xlane.f32.xlu0 %v2142_v62 }
 0xebd   : > { %v2080_v1 = vpop.f32.mrb[36].mxu0 }
 0xebe   : > { %v2133_v2 = vmul.f32 0.25, %v2080_v1  ;;  %v3269_v3 = vpop.f32.mrb[37].mxu0 }
 0xebf   : > { %v2083_v5 = vpop.f32.mrb[38].mxu0 }
 0xec0   : > { %v3270_v6 = vpop.f32.mrb[39].mxu0  ;;  %v2137_v7 = vsel %vm3959_vm7, %v2133_v2, -1e+30 }
 0xec1   : > { %v2145_v8 = vsel %vm1247_vm8, %v2137_v7, -inf }
 0xec2   : > { %2146 = vmax.xlane.f32.xlu0 %v2145_v8 }
 0xf3f   : > { %v2141_v9 = vpop.xlane.xlu1 %2140 }
 0xf40   : > { %v2151_v10 = vsub.f32 %v2135_v37, %v2141_v9 }
 0xf42   : > { %v2155_v11 = vmul.f32 1.442695, %v2151_v10 }
 0xf43   : > { %v2150_v12 = vpop.xlane.xlu1 %2149 }
 0xf44   : > { %3502 = vpow2.f32 %v2155_v11  ;;  %v2154_v14 = vsub.f32 %v2138_v52, %v2150_v12 }
 0xf46   : > { %v2161_v15 = vmul.f32 1.442695, %v2154_v14 }
 0xf47   : > { %v2144_v16 = vpop.xlane.xlu0 %2143 }
 0xf48   : > { %3504 = vpow2.f32 %v2161_v15  ;;  %v2152_v17 = vsub.f32 %v2136_v61, %v2144_v16 }
 0xf4a   : > { %v2157_v20 = vmul.f32 1.442695, %v2152_v17 }
 0xf4c   : > { %3506 = vpow2.f32 %v2157_v20 }
 0xf4e   : > { %v3503_v25 = vpop.eup %3502 }
 0xf4f   : > { %v2147_v42 = vpop.xlane.xlu0 %2146  ;;  %v2163_v13 = vsel %vm1247_vm8, %v3503_v25, 0.0 }
 0xf50   : > { %v2153_v44 = vsub.f32 %v2137_v7, %v2147_v42  ;;  %2164 = vadd.xlane.f32.xlu0 %v2163_v13 }
 0xf52   : > { %v3505_v45 = vpop.eup %3504  ;;  %v2159_v46 = vmul.f32 1.442695, %v2153_v44 }
 0xf53   : > { %v2172_v47 = vsel %vm1247_vm8, %v3505_v45, 0.0 }
 0xf54   : > { %3508 = vpow2.f32 %v2159_v46  ;;  %2173 = vadd.xlane.f32.xlu1 %v2172_v47  ;;  %v3444_v46 = vld [vmem:[%s4401_s17] ss:$8 sps:$4 sm:$0xff]   ;;  %v3447_v47 = vld [vmem:[%s4401_s17 + $0x10] ss:$8 sps:$4 sm:$0xff]  }
 0xf56   : > { %v3507_v21 = vpop.eup %3506 }
 0xf57   : > { %v2166_v48 = vsel %vm1247_vm8, %v3507_v21, 0.0 }
 0xf58   : > { %2167 = vadd.xlane.f32.xlu1 %v2166_v48  ;;  %v3450_v48 = vld [vmem:[%s4401_s17 + $0x20] ss:$8 sps:$4 sm:$0xff]  }
 0xf5e   : > { %v3509_v49 = vpop.eup %3508 }
 0xf5f   : > { %v2169_v22 = vsel %vm1247_vm8, %v3509_v49, 0.0 }
 0xf60   : > { %2170 = vadd.xlane.f32.xlu0 %v2169_v22  ;;  %v3455_v22 = vld [vmem:[%s4401_s17 + $0x34] ss:$8 sps:$4 sm:$0xff]  }
 0xf69   : > { %2278 = vrot.lane.b32.xlu1 %v4148_v27, %s4451_s2 }
 0xf76   : > { %2185 = vrot.lane.b32.xlu0 %v4148_v27, %s4452_s21 }
 0xfdd   : > { %v2165_v50 = vpop.xlane.xlu0 %2164 }
 0xfde   : > { %3510 = vrcp.f32 %v2165_v50 }
 0xfe1   : > { %v2174_v4 = vpop.xlane.xlu1 %2173 }
 0xfe5   : > { %v2168_v23 = vpop.xlane.xlu1 %2167 }
 0xfe6   : > { %3512 = vrcp.f32 %v2168_v23 }
 0xfe7   : > { %3514 = vrcp.f32 %v2174_v4 }
 0xfe8   : > { %v3511_v26 = vpop.eup %3510 }
 0xfe9   : > { %v2179_v59 = vmul.f32 %v3511_v26, %v3503_v25  ;;  %v2279_v29 = vpop.permute.xlu1 %2278  ;;  %v2964_v26 = vld [vmem:[%s4397_s13] ss:$0 sm:$0xff] }
 0xfea   : > { %v2284_v33 = vsel %vm1299_vm9, %v2279_v29, 0  ;;  %v3458_v29 = vld [vmem:[%s4402_s18 + $0x10] sm:$0xff]  }
 0xfed   : > { %v2171_v24 = vpop.xlane.xlu0 %2170 }
 0xfee   : > { %3516 = vrcp.f32 %v2171_v24 }
 0xff0   : > { %v3513_v58 = vpop.eup %3512 }
 0xff1   : > { %v2180_v18 = vmul.f32 %v3513_v58, %v3507_v21  ;;  %v2186_v19 = vpop.permute.xlu0 %2185  ;;  %v3515_v32 = vpop.eup %3514  ;;  %v3452_v21 = vld [vmem:[%s4401_s17 + $0x24] ss:$8 sps:$4 sm:$0xff]  }
 0xff2   : > { %v2191_v28 = vsel %vm1299_vm9, %v2186_v19, 0  ;;  %v2182_v35 = vmul.f32 %v3515_v32, %v3505_v45  ;;  %v3446_v45 = vld [vmem:[%s4401_s17 + $0x4] ss:$8 sps:$4 sm:$0xff]   ;;  %v3462_v32 = vld [vmem:[%s4402_s18 + $0x30] sm:$0xff]  }
 0xff3   : > { %3278 = vmatpush3.bf16.msra.mxu0 %v2191_v28  ;;  %3284 = vmatpush3.bf16.msra.mxu1 %v2191_v28  ;;  %v2183_v30 = vpack.c.bf16 %v2180_v18, %v2179_v59  ;;  %v3456_v19 = vld [vmem:[%s4402_s18] sm:$0xff]   ;;  %v3457_v28 = vld [vmem:[%s4402_s18 + $0x8] sm:$0xff]  }
 0xff4   : > { %3289 = vmatprep.subr.bf16.mxu0 %v3592_v31  ;;  %3295 = vmatprep.subr.bf16.mxu1 %v3592_v31 }
 0xff5   : > { %v2234_v27 = vrot.slane %v2183_v30, 4 }
 0xff6   : > { %3280 = vmatmul.mubr.msk.bf16.vlgmr.msra.gmra.mrb[40].mxu0 %vm1247_vm8, %v2183_v30  ;;  %v3460_v30 = vld [vmem:[%s4402_s18 + $0x20] sm:$0xff]  }
 0xff7   : > { %3286 = vmatmul.mubr.msk.bf16.vlgmr.msra.gmra.mrb[40].mxu1 %vm1247_vm8, %v2234_v27  ;;  %3290 = vmatpush3.bf16.msra.mxu0 %v2284_v33  ;;  %v3461_v27 = vld [vmem:[%s4402_s18 + $0x28] sm:$0xff]  }
 0xff8   : > { %v3517_v34 = vpop.eup %3516  ;;  %3296 = vmatpush3.bf16.msra.mxu1 %v2284_v33  ;;  %3291 = vmatprep.mubr.msk.bf16.mxu0 %vm3593_vm5, %v3592_v31  ;;  %v3463_v33 = vld [vmem:[%s4402_s18 + $0x38] sm:$0xff]  }
 0xff9   : > { %v2181_v36 = vmul.f32 %v3517_v34, %v3509_v49  ;;  %3297 = vmatprep.mubr.msk.bf16.mxu1 %vm3593_vm5, %v3592_v31  ;;  %3301 = vmatprep.subr.bf16.mxu0 %v3592_v31  ;;  %v3453_v49 = vld [vmem:[%s4401_s17 + $0x30] ss:$8 sps:$4 sm:$0xff]  }
 0xffa   : > { %2531 = vmatprep.subr.bf16.mxu1 %v3446_v45 }
 0xffb   : > { %v2184_v37 = vpack.c.bf16 %v2182_v35, %v2181_v36 }
 0xffd   : > { %v2327_v38 = vrot.slane %v2184_v37, 4 }
 0xffe   : > { %3292 = vmatmul.mubr.msk.bf16.vlgmr.msra.gmra.mrb[44].mxu0 %vm1247_vm8, %v2184_v37 }
 0xfff   : > { %3298 = vmatmul.mubr.msk.bf16.vlgmr.msra.gmra.mrb[44].mxu1 %vm1247_vm8, %v2327_v38  ;;  %3309 = vmatprep.mubr.msk.bf16.mxu0 %vm3593_vm5, %v3592_v31 }
0x1000   : > { %2563 = vmatprep.mubr.bf16.mxu1 %v3590_v0  ;;  %3302 = vmatpush3.bf16.msra.mxu0 %v3440_v39 }
0x1001   : > { %3303 = vmatprep.subr.bf16.mxu0 %v3592_v31  ;;  %2532 = vmatpush1.bf16.msra.mxu1 %v3444_v46 }
0x1004   : > { %3304 = vmatpush3.bf16.msra.mxu0 %v3441_v40 }
0x1005   : > { %3305 = vmatprep.subr.bf16.mxu0 %v3592_v31 }
0x1008   : > { %3306 = vmatpush3.bf16.msra.mxu0 %v3442_v41 }
0x1009   : > { %3307 = vmatprep.subr.bf16.mxu0 %v3592_v31 }
0x100c   : > { %3308 = vmatpush3.bf16.msra.mxu0 %v3443_v43 }
0x100d   : > { %3313 = vmatprep.subr.bf16.mxu0 %v3592_v31 }
0x10c9   : > { %v2227_v51 = vpop.f32.mrb[40].mxu0 }
0x10ca   : > { %v3281_v52 = vpop.f32.mrb[41].mxu0  ;;  %v2272_v53 = vpop.f32.mrb[40].mxu1 }
0x10cb   : > { %v2230_v54 = vpop.f32.mrb[42].mxu0  ;;  %2372 = vrot.lane.b32.xlu1 %v2272_v53, %s4451_s2  ;;  %v3287_v55 = vpop.f32.mrb[41].mxu1 }
0x10cc   : > { %v3282_v56 = vpop.f32.mrb[43].mxu0  ;;  %v2275_v57 = vpop.f32.mrb[42].mxu1 }
0x10cd   : > { %v3288_v60 = vpop.f32.mrb[43].mxu1 }
0x10d1   : > { %v2320_v61 = vpop.f32.mrb[44].mxu0 }
0x10d2   : > { %2376 = vrot.lane.b32.xlu0 %v2320_v61, %s4452_s21  ;;  %v3293_v62 = vpop.f32.mrb[45].mxu0  ;;  %v2365_v1 = vpop.f32.mrb[44].mxu1  ;;  %v3466_v61 = vld [vmem:[%s4404_s20 + $0x4] ss:$8 sps:$4 sm:$0xff]  }
0x10d3   : > { %v2323_v2 = vpop.f32.mrb[46].mxu0  ;;  %2380 = vrot.lane.b32.xlu1 %v2365_v1, %s4449_s27  ;;  %v3299_v3 = vpop.f32.mrb[45].mxu1  ;;  %v3464_v62 = vld [vmem:[%s4404_s20] ss:$8 sps:$4 sm:$0xff]   ;;  %v3469_v1 = vld [vmem:[%s4404_s20 + $0x14] ss:$8 sps:$4 sm:$0xff]  }
0x10d4   : > { %v3294_v5 = vpop.f32.mrb[47].mxu0  ;;  %v2368_v6 = vpop.f32.mrb[46].mxu1  ;;  %v3467_v2 = vld [vmem:[%s4404_s20 + $0x10] ss:$8 sps:$4 sm:$0xff]   ;;  %v3472_v3 = vld [vmem:[%s4404_s20 + $0x24] ss:$8 sps:$4 sm:$0xff]  }
0x10d5   : > { %v3300_v7 = vpop.f32.mrb[47].mxu1  ;;  %v3470_v5 = vld [vmem:[%s4404_s20 + $0x20] ss:$8 sps:$4 sm:$0xff]   ;;  %v3473_v6 = vld [vmem:[%s4404_s20 + $0x30] ss:$8 sps:$4 sm:$0xff]   ;;  %s645_s27 = sand.u32 1, %s3580_s25  }
0x10d6   : > { %v3475_v7 = vld [vmem:[%s4404_s20 + $0x34] ss:$8 sps:$4 sm:$0xff]   ;;  %s2875_s2 = sshll.u32 %s645_s27, 4  ;;  %s2798_s26 = scalar_lea.sflag [#allocation3], %s645_s27 }
0x10d7   : > { %s647_s21 = scalar_lea.vmem [#allocation2], %s2875_s2 }
0x10d8   : > { %s2812_s19 = sshll.u32 %s647_s21, 4  ;;  %s4339_s19 = int_to_ptr.vmem [resolvable:$true] %s2812_s19 }
0x10d9   : > { %s3526_s30 = scalar_lea.vmem %s4339_s19, 256 }
0x10da   : > { %p3527_p11 = scmp.ne.s32.totalorder %s4339_s19, %s3526_s30 }
0x10dc   : > { %p3528_p12 = pnand %p3527_p11, %p3750_p5 }
0x10de   : > { %p3529_p13 = pneg %p3528_p12 }
0x113d   : > { %v2373_v8 = vpop.permute.xlu1 %2372 }
0x113e   : > { %v2383_v9 = vsel %vm1052_vm6, %v2227_v51, %v2373_v8 }
0x1144   : > { %v2377_v10 = vpop.permute.xlu0 %2376 }
0x1145   : > { %v2384_v11 = vsel %vm1494_vm10, %v2383_v9, %v2377_v10  ;;  %v2381_v12 = vpop.permute.xlu1 %2380 }
0x1146   : > { %v2385_v14 = vsel %vm1496_vm11, %v2384_v11, %v2381_v12  ;;  %v2983_v12 = vld [vmem:[%s4453_s28] ss:$0 sm:$0xff]  ;;  %s3530_s28 = sshll.u32 %s3601_s3, 4  ;;  %s3531_s28 = int_to_ptr.vmem [resolvable:$false] %s3530_s28 }
0x1147   : > { %v2386_v15 = vpack.c.bf16 %v2385_v14, %v2385_v14  ;;  %s3532_s2 = scalar_lea.vmem %s3531_s28, 512  ;;  %p3533_p0 = scmp.lt.s32.totalorder %s4339_s19, %s3531_s28 }
0x1148   : > { %p3534_p1 = scmp.lt.s32.totalorder %s3532_s2, %s3526_s30 }
0x1149   : > { %3310 = vmatmul.mubr.msk.bf16.vlgmr.msra.gmra.mrb[48].mxu0 %vm857_vm4, %v2386_v15 }
0x114a   : > { %3329 = vmatprep.mubr.msk.bf16.mxu0 %vm3593_vm5, %v3592_v31  ;;  %3314 = vmatpush3.bf16.msra.mxu0 %v3456_v19  ;;  %p3535_p2 = por %p3534_p1, %p3533_p0 }
0x114b   : > { %3315 = vmatprep.subr.bf16.mxu0 %v3592_v31 }
0x114c   : > { %p3536_p3 = pnand %p3535_p2, %p3529_p13 }
0x114e   : > { %3316 = vmatpush3.bf16.msra.mxu0 %v3457_v28 }
0x114f   : > { %3317 = vmatprep.subr.bf16.mxu0 %v3592_v31 }
0x1152   : > { %3318 = vmatpush3.bf16.msra.mxu0 %v3458_v29 }
0x1153   : > { %3319 = vmatprep.subr.bf16.mxu0 %v3592_v31 }
0x121c   : > { %v2456_v16 = vpop.f32.mrb[48].mxu0 }
0x121d   : > { %v4241_v17 = vadd.f32 %v2456_v16, %v4097_v63  ;;  %v3311_v20 = vpop.f32.mrb[49].mxu0  ;;  %v3449_v63 = vld [vmem:[%s4401_s17 + $0x14] ss:$8 sps:$4 sm:$0xff]  }
0x121e   : > { %v2459_v25 = vpop.f32.mrb[50].mxu0  ;;  %2533 = vmatprep.subr.bf16.mxu1 %v3449_v63 }
0x121f   : > { %v3312_v42 = vpop.f32.mrb[51].mxu0  ;;  %v2464_v13 = vmul.f32 %v4241_v17, %v4241_v17  ;;  %2534 = vmatpush1.bf16.msra.mxu1 %v3447_v47 }
0x1220   : > { %2535 = vmatprep.subr.bf16.mxu1 %v3452_v21 }
0x1221   : > { %v2465_v44 = vsel %vm857_vm4, %v2464_v13, 0.0 }
0x1222   : > { %2466 = vadd.xlane.f32.xlu0 %v2465_v44 }
0x1223   : > { %2536 = vmatpush1.bf16.msra.mxu1 %v3450_v48 }
0x1224   : > { %2537 = vmatprep.subr.bf16.mxu1 %v3455_v22 }
0x1227   : > { %2538 = vmatpush1.bf16.msra.mxu1 %v3453_v49 }
0x1228   : > { %2754 = vmatprep.subr.bf16.mxu1 %v3466_v61 }
0x12af   : > { %v2467_v50 = vpop.xlane.xlu0 %2466 }
0x12b0   : > { %v2468_v4 = vmul.f32 0.015625, %v2467_v50 }
0x12b2   : > { %v2469_v23 = vadd.f32 1e-06, %v2468_v4 }
0x12b4   : > { %3518 = vrsqrt.f32 %v2469_v23 }
0x12be   : > { %v3519_v24 = vpop.eup %3518 }
0x12bf   : > { %v2471_v58 = vmul.f32 %v3519_v24, %v4241_v17 }
0x12c1   : > { %v2478_v59 = vmul.f32 %v2964_v26, %v2471_v58 }
0x12c3   : > { %v2479_v18 = vpack.c.bf16 %v2478_v59, %v2478_v59 }
0x12c5   : > { %2973 = vmatmul.mubr.msk.bf16.vlgmr.msra.gmra.mrb[48].mxu1 %vm857_vm4, %v2479_v18 }
0x12c6   : > { %2786 = vmatprep.mubr.bf16.mxu1 %v3590_v0  ;;  %v3459_v0 = vld [vmem:[%s4402_s18 + $0x18] sm:$0xff]   ;;  %2755 = vmatpush1.bf16.msra.mxu1 %v3464_v62 }
0x12c7   : > { %3320 = vmatpush3.bf16.msra.mxu0 %v3459_v0  ;;  %2756 = vmatprep.subr.bf16.mxu1 %v3469_v1 }
0x12c8   : > { %3321 = vmatprep.subr.bf16.mxu0 %v3592_v31 }
0x12ca   : > { %2757 = vmatpush1.bf16.msra.mxu1 %v3467_v2 }
0x12cb   : > { %3322 = vmatpush3.bf16.msra.mxu0 %v3460_v30  ;;  %2758 = vmatprep.subr.bf16.mxu1 %v3472_v3 }
0x12cc   : > { %3323 = vmatprep.subr.bf16.mxu0 %v3592_v31 }
0x12ce   : > { %2759 = vmatpush1.bf16.msra.mxu1 %v3470_v5 }
0x12cf   : > { %3324 = vmatpush3.bf16.msra.mxu0 %v3461_v27  ;;  %2760 = vmatprep.subr.bf16.mxu1 %v3475_v7 }
0x12d0   : > { %3325 = vmatprep.subr.bf16.mxu0 %v3592_v31 }
0x12d2   : > { %2761 = vmatpush1.bf16.msra.mxu1 %v3473_v6 }
0x12d3   : > { %3326 = vmatpush3.bf16.msra.mxu0 %v3462_v32 }
0x12d4   : > { %3327 = vmatprep.subr.bf16.mxu0 %v3592_v31 }
0x12d7   : > { %3328 = vmatpush3.bf16.msra.mxu0 %v3463_v33 }
0x1398   : > { %v2565_v34 = vpop.f32.mrb[48].mxu1 }
0x1399   : > { %v2974_v35 = vmul.f32 -1.442695, %v2565_v34  ;;  %v2567_v36 = vpop.f32.mrb[49].mxu1 }
0x139a   : > { %v2569_v37 = vpop.f32.mrb[50].mxu1 }
0x139b   : > { %3520 = vpow2.f32 %v2974_v35  ;;  %v2570_v38 = vpop.f32.mrb[51].mxu1 }
0x13a5   : > { %v3521_v39 = vpop.eup %3520 }
0x13a6   : > { %v2575_v40 = vadd.f32 1.0, %v3521_v39 }
0x13a8   : > { %3522 = vrcp.f32 %v2575_v40 }
0x13b2   : > { %v3523_v41 = vpop.eup %3522 }
0x13b3   : > { %v2578_v43 = vmul.f32 %v3523_v41, %v2565_v34 }
0x13b5   : > { %v2579_v51 = vmul.f32 %v2578_v43, %v2567_v36 }
0x13b7   : > { %v2580_v52 = vpack.c.bf16 %v2579_v51, %v2579_v51 }
0x13b9   : > { %3330 = vmatmul.mubr.bf16.vlgmr.msra.gmra.mrb[52].mxu0 %v2580_v52 }
0x148c   : > { %v2679_v31 = vpop.f32.mrb[52].mxu0 }
0x148d   : > { %v2685_v53 = vadd.f32 %v2679_v31, %v4241_v17  ;;  %v3331_v54 = vpop.f32.mrb[53].mxu0 }
0x148e   : > { %v2682_v55 = vpop.f32.mrb[54].mxu0 }
0x148f   : > { %v3332_v56 = vpop.f32.mrb[55].mxu0  ;;  %v2687_v57 = vmul.f32 %v2685_v53, %v2685_v53 }
0x1491   : > { %v2688_v60 = vsel %vm857_vm4, %v2687_v57, 0.0 }
0x1492   : > { %2689 = vadd.xlane.f32.xlu1 %v2688_v60 }
0x151f   : > { %v2690_v8 = vpop.xlane.xlu1 %2689 }
0x1520   : > { %v2691_v9 = vmul.f32 0.015625, %v2690_v8 }
0x1522   : > { %v2692_v10 = vadd.f32 1e-06, %v2691_v9 }
0x1524   : > { %3524 = vrsqrt.f32 %v2692_v10 }
0x152e   : > { %v3525_v11 = vpop.eup %3524 }
0x152f   : > { %v2694_v14 = vmul.f32 %v3525_v11, %v2685_v53 }
0x1531   : > { %v2701_v15 = vmul.f32 %v2983_v12, %v2694_v14 }
0x1533   : > { %v2702_v16 = vpack.c.bf16 %v2701_v15, %v2701_v15 }
0x1535   : > { %2992 = vmatmul.mubr.msk.bf16.vlgmr.msra.gmra.mrb[52].mxu1 %vm857_vm4, %v2702_v16 }
0x1608   : > { %v2788_v17 = vpop.f32.mrb[52].mxu1 }
0x1609   : > { %2795 = vst [vmem:[%s647_s21] sm:$0xff] %v2788_v17  ;;  %v2790_v20 = vpop.f32.mrb[53].mxu1 }
0x160a   : > { %2796 = vst [vmem:[%s647_s21 + $0x8] sm:$0xff] %v2790_v20  ;;  %v2792_v25 = vpop.f32.mrb[54].mxu1 }
0x160b   : > { %v2793_v42 = vpop.f32.mrb[55].mxu1 }
0x160c   : > { %3539 = shalt.err (!%p3536_p3)
}
0x160d   : > { %s3540_s27 = scalar_lea.hbm %s4344_s1, 256  ;;  %s3544_s4 = scalar_lea.hbm %s4455_s23, 512 }
0x160e   : > { %p3541_p4 = scmp.ne.s32.totalorder %s4344_s1, %s3540_s27  ;;  %p3545_p9 = scmp.lt.u32.totalorder %s4344_s1, %s4455_s23 }
0x160f   : > { %p3546_p10 = scmp.lt.u32.totalorder %s3544_s4, %s3540_s27  ;;  %p3548_p12 = scmp.lt.u32.totalorder %s3540_s27, %s4344_s1 }
0x1610   : > { %p3542_p7 = pnand %p3541_p4, %p3750_p5 }
0x1611   : > { %p3547_p11 = por %p3546_p10, %p3545_p9 }
0x1612   : > { %p3543_p8 = pneg %p3542_p7 }
0x1613   : > { %p3549_p13 = por %p3548_p12, %p3547_p11 }
0x1615   : > { %p3550_p0 = pnand %p3549_p13, %p3543_p8 }
0x1617   : > { %3553 = shalt.err (!%p3550_p0)
}
0x1618   : > { %3333 = dma.vmem_to_hbm [thread:$0]  (%p3750_p5), %s4339_s19, 256, %s4344_s1, %s2798_s26  }
0x1619 PF: > { %s4456_s30 = sld [smem:[#allocation7_spill]]  ;;  %s4457_s28 = sld [smem:[#allocation5_spill]] }
0x161f   : > { %p3339_p1 = scmp.ge.s32.totalorder %s4456_s30, 2  ;;  %s2824_s21 = sand.u32 1, %s4457_s28  }
0x1620   : > { %s2825_s0 = scalar_lea.sflag [#allocation3], %s2824_s21 }
0x1621   : > { %p3336_p2 = pnand %p3339_p1, %p3754_p6 }
0x1623   : > { %3571 = dma.done.wait (!%p3336_p2), %s2825_s0, 256  }
0x1624   : > { %3573 = vsyncadd (!%p3336_p2), %s2825_s0, 4294967040  ;;  %s4459_s27 = sld [smem:[#allocation8_spill]]  ;;  %s4460_s4 = sld [smem:[#allocation6_spill]] }
0x1625   : > { %s4461_s26 = sld [smem:[#allocation9_spill]]  ;;  %s4462_s2 = smov %s3580_s25 }
0x162a   : > { %p31_p3 = scmp.ge.s32.totalorder %s4459_s27, 4   ;;  %s4463_s25 = smov %s4460_s4 }
0x162c   :  { %33 = sbr.rel (!%p31_p3) target bundleno = 12 (0xc), region = 139 }
0x1633   :  { %2830 = vsyncpa [#allocation3], 1 }
0x1634   :  { %2832 = vsyncpa [#allocation3 + $0x1], 1 }

</bundles_post_ra>
